<compile_context>
chip_gen: v6e
topology: v6e:2x2x1
jax: 0.10.0
libtpu: 0.0.40
codegen_flags: <defaults>
</compile_context>

<pallas_src>
import functools

import jax
import jax.numpy as jnp
from jax.experimental import pallas as pl
from jax.experimental.pallas import tpu as pltpu


_H1 = 256        # first hidden width (2 x 128 lanes)
_H2 = 500        # logical second hidden width
_H2_PAD = 512    # padded to 4 x 128 lanes (aligned K for the third matmul)
_OUT = 784       # output width (28*28): 6 x 128 + 16 lanes (last group masked)
_K_MIN = 128     # minimum contraction depth fed to the MXU


def _round_up(n, m):
    return ((n + m - 1) // m) * m


def decoder_kernel(x_ref, w1_ref, b1_ref, w2_ref, b2_ref, w3_ref, b3_ref, o_ref):
    # h1 = relu(x @ W1 + b1)      bf16 x bf16 -> f32 accumulate on the MXU
    h = jnp.dot(x_ref[...], w1_ref[...], preferred_element_type=jnp.float32)
    h = jnp.maximum(h + b1_ref[...], 0.0)

    # h2 = relu(h1 @ W2 + b2)     500 padded to 512; padded columns stay exactly 0
    h = jnp.dot(h.astype(w2_ref.dtype), w2_ref[...],
                preferred_element_type=jnp.float32)
    h = jnp.maximum(h + b2_ref[...], 0.0)

    # h3 = h2 @ W3 + b3           N = 784 directly (no output padding / slice)
    h = jnp.dot(h.astype(w3_ref.dtype), w3_ref[...],
                preferred_element_type=jnp.float32)
    h = h + b3_ref[...]

    # sigmoid = 1 / (1 + exp(-h)): exp and the approximate reciprocal both run
    # on the EUP slot, keeping the VALU free for the bias/ReLU filler.
    o_ref[...] = pl.reciprocal(1.0 + jnp.exp(-h), approx=True).astype(o_ref.dtype)


def prepare_decoder_params(params, use_bf16=True):
    """One-time pad/cast of the weights (hoisted out of the per-call forward)."""
    w1, b1, w2, b2, w3, b3 = params
    D = w1.shape[0]
    D_pad = max(_K_MIN, _round_up(D, _K_MIN))
    cd = jnp.bfloat16 if use_bf16 else jnp.float32

    w1_p = jnp.zeros((D_pad, _H1), cd).at[:D, :].set(w1.astype(cd))
    b1_p = jnp.asarray(b1, jnp.float32).reshape(1, _H1)
    w2_p = jnp.zeros((_H1, _H2_PAD), cd).at[:, :_H2].set(w2.astype(cd))
    b2_p = jnp.zeros((1, _H2_PAD), jnp.float32).at[:, :_H2].set(
        jnp.asarray(b2, jnp.float32).reshape(1, _H2))
    w3_p = jnp.zeros((_H2_PAD, _OUT), cd).at[:_H2, :].set(w3.astype(cd))
    b3_p = jnp.asarray(b3, jnp.float32).reshape(1, _OUT)
    return (w1_p, b1_p, w2_p, b2_p, w3_p, b3_p)


@functools.partial(jax.jit, static_argnames=("batch_tile",))
def decoder_forward(x, prepared_params, *, batch_tile=None):
    """x: (B, enc_dim) f32; prepared_params from prepare_decoder_params.

    Returns (B, 1, 28, 28) float32 (NCHW), matching the PyTorch module.
    """
    w1_p, b1_p, w2_p, b2_p, w3_p, b3_p = prepared_params
    B, D = x.shape
    D_pad = w1_p.shape[0]
    compute_dtype = w1_p.dtype
    in_itemsize = jnp.dtype(compute_dtype).itemsize

    # ---- batch tiling (16-row multiples: bf16 packs 16 sublanes per vreg) ----
    if batch_tile is None:
        batch_tile = 512               # large tile amortizes ~0.35us/step overhead
    batch_tile = max(16, _round_up(min(batch_tile, _round_up(B, 16)), 16))
    # Guarantee >= 2 grid steps when the batch allows it so the "parallel" axis
    # can be sharded across both TensorCores on v7x.
    if B > 16 and _round_up(B, batch_tile) // batch_tile < 2:
        batch_tile = max(16, min(batch_tile, _round_up((B + 1) // 2, 16)))
    B_pad = _round_up(B, batch_tile)

    # Only x is padded/cast per call (weights were prepared once).
    x_p = jnp.zeros((B_pad, D_pad), compute_dtype).at[:B, :D].set(
        x.astype(compute_dtype))

    grid = (B_pad // batch_tile,)

    # ---- advisory cost estimate + VMEM budget ----
    flops = 2 * B_pad * (D_pad * _H1 + _H1 * _H2_PAD + _H2_PAD * _OUT)
    weight_bytes = sum(int(a.size) * a.dtype.itemsize
                       for a in (w1_p, b1_p, w2_p, b2_p, w3_p, b3_p))
    bytes_accessed = B_pad * D_pad * in_itemsize + weight_bytes + B_pad * _OUT * 4
    cost = pl.CostEstimate(flops=flops,
                           transcendentals=2 * B_pad * _OUT,
                           bytes_accessed=bytes_accessed)

    # Double-buffered x/out tiles + weights, f32 intermediates, + headroom.
    # Clamped to [32 MiB, 56 MiB]: raises v5e's 16 MiB scoped default, stays
    # inside v7x's 64 MiB physical VMEM.
    tile_bytes = batch_tile * D_pad * in_itemsize + batch_tile * _OUT * 4
    scratch_bytes = batch_tile * (_H1 + _H2_PAD + _OUT) * 4
    vmem_limit = int(min(56 * 1024 * 1024,
                         max(32 * 1024 * 1024,
                             2 * (weight_bytes + tile_bytes) + scratch_bytes
                             + (8 << 20))))

    flat = pl.pallas_call(
        decoder_kernel,
        out_shape=jax.ShapeDtypeStruct((B_pad, _OUT), jnp.float32),
        grid_spec=pltpu.PrefetchScalarGridSpec(
            num_scalar_prefetch=0,
            grid=grid,
            in_specs=[
                pl.BlockSpec((batch_tile, D_pad), lambda i: (i, 0)),   # x tile
                pl.BlockSpec((D_pad, _H1), lambda i: (0, 0)),          # W1
                pl.BlockSpec((1, _H1), lambda i: (0, 0)),              # b1
                pl.BlockSpec((_H1, _H2_PAD), lambda i: (0, 0)),        # W2 (padded K)
                pl.BlockSpec((1, _H2_PAD), lambda i: (0, 0)),          # b2 (padded)
                pl.BlockSpec((_H2_PAD, _OUT), lambda i: (0, 0)),       # W3
                pl.BlockSpec((1, _OUT), lambda i: (0, 0)),             # b3
            ],
            out_specs=pl.BlockSpec((batch_tile, _OUT), lambda i: (i, 0)),
        ),
        compiler_params=pltpu.CompilerParams(
            dimension_semantics=("parallel",),
            vmem_limit_bytes=vmem_limit,
        ),
        cost_estimate=cost,
    )(x_p, w1_p, b1_p, w2_p, b2_p, w3_p, b3_p)

    # 784 -> (1, 28, 28) is a free metadata reshape; only padded batch rows
    # (if any) are dropped.
    return flat[:B].reshape(B, 1, 28, 28)


def init_decoder_params(key, encoding_dim):
    """Deterministic init mimicking nn.Linear default (uniform +-1/sqrt(fan_in)).

    Weights stored as (in_features, out_features): kernel computes x @ W + b,
    equivalent to PyTorch's x @ W_pt.T + b.
    """
    def linear(k, fan_in, fan_out):
        kw, kb = jax.random.split(k)
        bound = 1.0 / jnp.sqrt(fan_in)
        w = jax.random.uniform(kw, (fan_in, fan_out), jnp.float32, -bound, bound)
        b = jax.random.uniform(kb, (1, fan_out), jnp.float32, -bound, bound)
        return w, b

    k1, k2, k3 = jax.random.split(key, 3)
    w1, b1 = linear(k1, encoding_dim, _H1)
    w2, b2 = linear(k2, _H1, _H2)
    w3, b3 = linear(k3, _H2, _OUT)
    return (w1, b1, w2, b2, w3, b3)


def decoder_reference(x, params, *, match_bf16=True):
    """Pure-JAX reference. match_bf16 applies the same bf16 casts the kernel uses."""
    w1, b1, w2, b2, w3, b3 = params

    def bf(a):
        return a.astype(jnp.bfloat16) if match_bf16 else a

    f32 = jnp.float32
    h = jnp.maximum(jnp.dot(bf(x), bf(w1), preferred_element_type=f32) + b1, 0.0)
    h = jnp.maximum(jnp.dot(bf(h), bf(w2), preferred_element_type=f32) + b2, 0.0)
    h = jnp.dot(bf(h), bf(w3), preferred_element_type=f32) + b3
    return jax.nn.sigmoid(h).reshape(x.shape[0], 1, 28, 28)


if __name__ == "__main__":
    key = jax.random.PRNGKey(0)
    k_param, k_x = jax.random.split(key)

    encoding_dim = 32
    batch = 8

    params = init_decoder_params(k_param, encoding_dim)
    prepared = prepare_decoder_params(params)          # one-time pad/cast
    x = jax.random.normal(k_x, (batch, encoding_dim), dtype=jnp.float32)

    out = decoder_forward(x, prepared)
    out = jax.block_until_ready(out)

    ref = decoder_reference(x, params, match_bf16=True)
    assert out.shape == (batch, 1, 28, 28), out.shape
    err = float(jnp.max(jnp.abs(out - ref)))
    # bf16 matmuls + approximate reciprocal in the sigmoid; output is in (0, 1).
    assert err < 1e-2, f"max abs err {err} vs reference"

    print("KERNEL_OK")
</pallas_src>

<mosaic_0001>
module attributes {stable_mosaic.version = 11 : i64} {
  func.func @decoder_kernel(%arg0: i32, %arg1: memref<16x128xbf16, #tpu.memory_space<vmem>>, %arg2: memref<128x256xbf16, #tpu.memory_space<vmem>>, %arg3: memref<1x256xf32, #tpu.memory_space<vmem>>, %arg4: memref<256x512xbf16, #tpu.memory_space<vmem>>, %arg5: memref<1x512xf32, #tpu.memory_space<vmem>>, %arg6: memref<512x784xbf16, #tpu.memory_space<vmem>>, %arg7: memref<1x784xf32, #tpu.memory_space<vmem>>, %arg8: memref<16x784xf32, #tpu.memory_space<vmem>>) attributes {dimension_semantics = [#tpu.dimension_semantics<parallel>], iteration_bounds = array<i64: 1>, scalar_prefetch = 0 : i64, scratch_operands = 0 : i64, tpu.core_type = #tpu.core_type<tc>, window_params = [{transform_indices = @transform_0, window_bounds = array<i64: 16, 128>}, {pipeline_mode = #tpu.pipeline_mode<synchronous>, transform_indices = @transform_1, window_bounds = array<i64: 128, 256>}, {pipeline_mode = #tpu.pipeline_mode<synchronous>, transform_indices = @transform_2, window_bounds = array<i64: 1, 256>}, {pipeline_mode = #tpu.pipeline_mode<synchronous>, transform_indices = @transform_3, window_bounds = array<i64: 256, 512>}, {pipeline_mode = #tpu.pipeline_mode<synchronous>, transform_indices = @transform_4, window_bounds = array<i64: 1, 512>}, {pipeline_mode = #tpu.pipeline_mode<synchronous>, transform_indices = @transform_5, window_bounds = array<i64: 512, 784>}, {pipeline_mode = #tpu.pipeline_mode<synchronous>, transform_indices = @transform_6, window_bounds = array<i64: 1, 784>}, {transform_indices = @transform_7, window_bounds = array<i64: 16, 784>}]} {
    %c0 = arith.constant 0 : index
    %c0_0 = arith.constant 0 : index
    %0 = vector.load %arg1[%c0, %c0_0] : memref<16x128xbf16, #tpu.memory_space<vmem>>, vector<16x128xbf16>
    %c0_1 = arith.constant 0 : index
    %c0_2 = arith.constant 0 : index
    %1 = vector.load %arg2[%c0_1, %c0_2] : memref<128x256xbf16, #tpu.memory_space<vmem>>, vector<128x256xbf16>
    %cst = arith.constant dense<0.000000e+00> : vector<16x256xf32>
    %2 = tpu.matmul %0, %1, %cst {dimension_numbers = #tpu.dot_dimension_numbers<[1], [0], [0], [1], [0, 0, 1, 1], [], []>} : vector<16x128xbf16>, vector<128x256xbf16>, vector<16x256xf32> -> vector<16x256xf32>
    %c0_3 = arith.constant 0 : index
    %c0_4 = arith.constant 0 : index
    %3 = vector.load %arg3[%c0_3, %c0_4] : memref<1x256xf32, #tpu.memory_space<vmem>>, vector<1x256xf32>
    %4 = vector.broadcast %3 : vector<1x256xf32> to vector<16x256xf32>
    %5 = arith.addf %2, %4 : vector<16x256xf32>
    %cst_5 = arith.constant 0.000000e+00 : f32
    %6 = vector.broadcast %cst_5 : f32 to vector<16x256xf32>
    %7 = arith.maximumf %5, %6 : vector<16x256xf32>
    %8 = arith.truncf %7 : vector<16x256xf32> to vector<16x256xbf16>
    %c0_6 = arith.constant 0 : index
    %c0_7 = arith.constant 0 : index
    %9 = vector.load %arg4[%c0_6, %c0_7] : memref<256x512xbf16, #tpu.memory_space<vmem>>, vector<256x512xbf16>
    %cst_8 = arith.constant dense<0.000000e+00> : vector<16x512xf32>
    %10 = tpu.matmul %8, %9, %cst_8 {dimension_numbers = #tpu.dot_dimension_numbers<[1], [0], [0], [1], [0, 0, 1, 1], [], []>} : vector<16x256xbf16>, vector<256x512xbf16>, vector<16x512xf32> -> vector<16x512xf32>
    %c0_9 = arith.constant 0 : index
    %c0_10 = arith.constant 0 : index
    %11 = vector.load %arg5[%c0_9, %c0_10] : memref<1x512xf32, #tpu.memory_space<vmem>>, vector<1x512xf32>
    %12 = vector.broadcast %11 : vector<1x512xf32> to vector<16x512xf32>
    %13 = arith.addf %10, %12 : vector<16x512xf32>
    %cst_11 = arith.constant 0.000000e+00 : f32
    %14 = vector.broadcast %cst_11 : f32 to vector<16x512xf32>
    %15 = arith.maximumf %13, %14 : vector<16x512xf32>
    %16 = arith.truncf %15 : vector<16x512xf32> to vector<16x512xbf16>
    %c0_12 = arith.constant 0 : index
    %c0_13 = arith.constant 0 : index
    %17 = vector.load %arg6[%c0_12, %c0_13] : memref<512x784xbf16, #tpu.memory_space<vmem>>, vector<512x784xbf16>
    %cst_14 = arith.constant dense<0.000000e+00> : vector<16x784xf32>
    %18 = tpu.matmul %16, %17, %cst_14 {dimension_numbers = #tpu.dot_dimension_numbers<[1], [0], [0], [1], [0, 0, 1, 1], [], []>} : vector<16x512xbf16>, vector<512x784xbf16>, vector<16x784xf32> -> vector<16x784xf32>
    %c0_15 = arith.constant 0 : index
    %c0_16 = arith.constant 0 : index
    %19 = vector.load %arg7[%c0_15, %c0_16] : memref<1x784xf32, #tpu.memory_space<vmem>>, vector<1x784xf32>
    %20 = vector.broadcast %19 : vector<1x784xf32> to vector<16x784xf32>
    %21 = arith.addf %18, %20 : vector<16x784xf32>
    %cst_17 = arith.constant 0.000000e+00 : f32
    %22 = vector.broadcast %cst_17 : f32 to vector<16x784xf32>
    %23 = arith.subf %22, %21 : vector<16x784xf32>
    %24 = math.exp %23 : vector<16x784xf32>
    %cst_18 = arith.constant 1.000000e+00 : f32
    %25 = vector.broadcast %cst_18 : f32 to vector<16x784xf32>
    %26 = arith.addf %25, %24 : vector<16x784xf32>
    %27 = tpu.reciprocal %26 {approx = true} : vector<16x784xf32> -> vector<16x784xf32>
    %c0_19 = arith.constant 0 : index
    %c0_20 = arith.constant 0 : index
    %28 = vector.load %arg8[%c0_19, %c0_20] : memref<16x784xf32, #tpu.memory_space<vmem>>, vector<16x784xf32>
    tpu.vector_store %arg8[%c0_19, %c0_20], %27 {strides = array<i32>} : memref<16x784xf32, #tpu.memory_space<vmem>>, vector<16x784xf32>,
    return
  }
  func.func @transform_0(%arg0: i32) -> (i32, i32) {
    %c0_i32 = arith.constant 0 : i32
    %c0_i32_0 = arith.constant 0 : i32
    return %arg0, %c0_i32 : i32, i32
  }
  func.func @transform_1(%arg0: i32) -> (i32, i32) {
    %c0_i32 = arith.constant 0 : i32
    %c0_i32_0 = arith.constant 0 : i32
    %c0_i32_1 = arith.constant 0 : i32
    return %c0_i32, %c0_i32_0 : i32, i32
  }
  func.func @transform_2(%arg0: i32) -> (i32, i32) {
    %c0_i32 = arith.constant 0 : i32
    %c0_i32_0 = arith.constant 0 : i32
    %c0_i32_1 = arith.constant 0 : i32
    return %c0_i32, %c0_i32_0 : i32, i32
  }
  func.func @transform_3(%arg0: i32) -> (i32, i32) {
    %c0_i32 = arith.constant 0 : i32
    %c0_i32_0 = arith.constant 0 : i32
    %c0_i32_1 = arith.constant 0 : i32
    return %c0_i32, %c0_i32_0 : i32, i32
  }
  func.func @transform_4(%arg0: i32) -> (i32, i32) {
    %c0_i32 = arith.constant 0 : i32
    %c0_i32_0 = arith.constant 0 : i32
    %c0_i32_1 = arith.constant 0 : i32
    return %c0_i32, %c0_i32_0 : i32, i32
  }
  func.func @transform_5(%arg0: i32) -> (i32, i32) {
    %c0_i32 = arith.constant 0 : i32
    %c0_i32_0 = arith.constant 0 : i32
    %c0_i32_1 = arith.constant 0 : i32
    return %c0_i32, %c0_i32_0 : i32, i32
  }
  func.func @transform_6(%arg0: i32) -> (i32, i32) {
    %c0_i32 = arith.constant 0 : i32
    %c0_i32_0 = arith.constant 0 : i32
    %c0_i32_1 = arith.constant 0 : i32
    return %c0_i32, %c0_i32_0 : i32, i32
  }
  func.func @transform_7(%arg0: i32) -> (i32, i32) {
    %c0_i32 = arith.constant 0 : i32
    %c0_i32_0 = arith.constant 0 : i32
    return %arg0, %c0_i32 : i32, i32
  }
}

</mosaic_0001>

<bundles_post_ra>
// kernel: decoder_forward.1
= control target key start
LH: loop header
LB: loop body
LE: loop exit
PB: predicated region body
PF: predicated region fallthrough
CT: control target
= control target key end

     0   :  { %v3417_v1 = vmov 0   ;;  %vm2557_vm0 = vcmask 130048   ;;  %s4484_s1 = inlined_call_operand.vmem [shape: bf16[128,256], index: 1, kind: input, shape index: {}]   ;;  %s4485_s0 = inlined_call_operand.vmem [shape: bf16[16,128], index: 0, kind: input, shape index: {}]   ;;  %s4486_s3 = inlined_call_operand.vmem [shape: bf16[256,512], index: 3, kind: input, shape index: {}]   ;;  %s4487_s5 = inlined_call_operand.vmem [shape: bf16[512,784], index: 5, kind: input, shape index: {}]   ;;  %s4488_s2 = inlined_call_operand.vmem [shape: f32[1,256], index: 2, kind: input, shape index: {}]   ;;  %s4489_s4 = inlined_call_operand.vmem [shape: f32[1,512], index: 4, kind: input, shape index: {}]   ;;  %s4490_s6 = inlined_call_operand.vmem [shape: f32[1,784], index: 6, kind: input, shape index: {}]   ;;  %s4491_s7 = inlined_call_operand.vmem [shape: f32[16,784], index: 7, kind: output, shape index: {}]  }
   0x1   :  { %v2920_v0 = vld [vmem:[%s4484_s1 + $0x74] ss:$8 sps:$4 sm:$0xff]   ;;  %175 = vmatprep.mubr.bf16.mxu0 %v3417_v1  ;;  %v2922_v2 = vld [vmem:[%s4484_s1 + $0x70] ss:$8 sps:$4 sm:$0xff]   ;;  %v2923_v3 = vld [vmem:[%s4484_s1 + $0x64] ss:$8 sps:$4 sm:$0xff]  }
   0x2   :  { %143 = vmatprep.subr.bf16.mxu0 %v2920_v0  ;;  %v2925_v4 = vld [vmem:[%s4484_s1 + $0x60] ss:$8 sps:$4 sm:$0xff]   ;;  %v2926_v5 = vld [vmem:[%s4484_s1 + $0x54] ss:$8 sps:$4 sm:$0xff]   ;;  %v2928_v6 = vld [vmem:[%s4484_s1 + $0x50] ss:$8 sps:$4 sm:$0xff]  }
   0x3   :  { %144 = vmatpush1.bf16.msra.mxu0 %v2922_v2  ;;  %v2929_v7 = vld [vmem:[%s4484_s1 + $0x44] ss:$8 sps:$4 sm:$0xff]   ;;  %v2931_v8 = vld [vmem:[%s4484_s1 + $0x40] ss:$8 sps:$4 sm:$0xff]   ;;  %v2932_v9 = vld [vmem:[%s4484_s1 + $0x34] ss:$8 sps:$4 sm:$0xff]  }
   0x4   :  { %145 = vmatprep.subr.bf16.mxu0 %v2923_v3  ;;  %v2945_v10 = vld [vmem:[%s4486_s3 + $0xe4] ss:$16 sps:$4 sm:$0xff]   ;;  %v2934_v11 = vld [vmem:[%s4484_s1 + $0x30] ss:$8 sps:$4 sm:$0xff]   ;;  %v2937_v17 = vld [vmem:[%s4484_s1 + $0x20] ss:$8 sps:$4 sm:$0xff]  }
   0x5   :  { %598 = vmatprep.subr.bf16.mxu1 %v2945_v10  ;;  %v2950_v12 = vld [vmem:[%s4486_s3 + $0xe0] ss:$16 sps:$4 sm:$0xff]   ;;  %v2951_v13 = vld [vmem:[%s4486_s3 + $0xc4] ss:$16 sps:$4 sm:$0xff]   ;;  %v2949_v26 = vld [vmem:[%s4486_s3 + $0xec] ss:$16 sps:$4 sm:$0xff]  }
   0x6   :  { %v2935_v14 = vld [vmem:[%s4484_s1 + $0x24] ss:$8 sps:$4 sm:$0xff]   ;;  %599 = vmatpush1.bf16.msra.mxu1 %v2950_v12  ;;  %v2956_v15 = vld [vmem:[%s4486_s3 + $0xc0] ss:$16 sps:$4 sm:$0xff]   ;;  %v2938_v18 = vld [vmem:[%s4484_s1 + $0x14] ss:$8 sps:$4 sm:$0xff]  }
   0x7   :  { %146 = vmatpush1.bf16.msra.mxu0 %v2925_v4  ;;  %600 = vmatprep.subr.bf16.mxu1 %v2951_v13  ;;  %v2957_v16 = vld [vmem:[%s4486_s3 + $0xa4] ss:$16 sps:$4 sm:$0xff]   ;;  %v2962_v19 = vld [vmem:[%s4486_s3 + $0xa0] ss:$16 sps:$4 sm:$0xff]   ;;  %v2947_v30 = vld [vmem:[%s4486_s3 + $0xe8] ss:$16 sps:$4 sm:$0xff]  }
   0x8   :  { %147 = vmatprep.subr.bf16.mxu0 %v2926_v5  ;;  %v2963_v20 = vld [vmem:[%s4486_s3 + $0x84] ss:$16 sps:$4 sm:$0xff]   ;;  %v2940_v21 = vld [vmem:[%s4484_s1 + $0x10] ss:$8 sps:$4 sm:$0xff]   ;;  %v2943_v25 = vld [vmem:[%s4484_s1] ss:$8 sps:$4 sm:$0xff]  }
   0x9   :  { %v2941_v22 = vld [vmem:[%s4484_s1 + $0x4] ss:$8 sps:$4 sm:$0xff]   ;;  %v2968_v23 = vld [vmem:[%s4486_s3 + $0x80] ss:$16 sps:$4 sm:$0xff]   ;;  %v2953_v34 = vld [vmem:[%s4486_s3 + $0xc8] ss:$16 sps:$4 sm:$0xff]  }
   0xa   :  { %601 = vmatpush1.bf16.msra.mxu1 %v2956_v15  ;;  %v2969_v24 = vld [vmem:[%s4486_s3 + $0x64] ss:$16 sps:$4 sm:$0xff]   ;;  %v2974_v27 = vld [vmem:[%s4486_s3 + $0x60] ss:$16 sps:$4 sm:$0xff]   ;;  %v2955_v31 = vld [vmem:[%s4486_s3 + $0xcc] ss:$16 sps:$4 sm:$0xff]  }
   0xb   :  { %148 = vmatpush1.bf16.msra.mxu0 %v2928_v6  ;;  %602 = vmatprep.subr.bf16.mxu1 %v2957_v16  ;;  %v2975_v28 = vld [vmem:[%s4486_s3 + $0x44] ss:$16 sps:$4 sm:$0xff]   ;;  %v2980_v32 = vld [vmem:[%s4486_s3 + $0x40] ss:$16 sps:$4 sm:$0xff]   ;;  %v2961_v35 = vld [vmem:[%s4486_s3 + $0xac] ss:$16 sps:$4 sm:$0xff]  }
   0xc   :  { %149 = vmatprep.subr.bf16.mxu0 %v2929_v7  ;;  %v2944_v29 = vld [vmem:[%s4485_s0] sm:$0xff]   ;;  %v2959_v38 = vld [vmem:[%s4486_s3 + $0xa8] ss:$16 sps:$4 sm:$0xff]   ;;  %v2967_v39 = vld [vmem:[%s4486_s3 + $0x8c] ss:$16 sps:$4 sm:$0xff]  }
   0xd   :  { %v2981_v33 = vld [vmem:[%s4486_s3 + $0x24] ss:$16 sps:$4 sm:$0xff]   ;;  %v2986_v36 = vld [vmem:[%s4486_s3 + $0x20] ss:$16 sps:$4 sm:$0xff]   ;;  %v2965_v42 = vld [vmem:[%s4486_s3 + $0x88] ss:$16 sps:$4 sm:$0xff]  }
   0xe   :  { %603 = vmatpush1.bf16.msra.mxu1 %v2962_v19  ;;  %v2987_v37 = vld [vmem:[%s4486_s3 + $0x4] ss:$16 sps:$4 sm:$0xff]   ;;  %v2992_v40 = vld [vmem:[%s4486_s3] ss:$16 sps:$4 sm:$0xff]   ;;  %v2973_v43 = vld [vmem:[%s4486_s3 + $0x6c] ss:$16 sps:$4 sm:$0xff]  }
   0xf   :  { %150 = vmatpush1.bf16.msra.mxu0 %v2931_v8  ;;  %604 = vmatprep.subr.bf16.mxu1 %v2963_v20  ;;  %v2993_v41 = vld [vmem:[%s4486_s3 + $0x1e4] ss:$16 sps:$4 sm:$0xff]   ;;  %v2998_v44 = vld [vmem:[%s4486_s3 + $0x1e0] ss:$16 sps:$4 sm:$0xff]   ;;  %v2971_v45 = vld [vmem:[%s4486_s3 + $0x68] ss:$16 sps:$4 sm:$0xff]   ;;  %v47_v20 = vlaneseq }
  0x10   :  { %151 = vmatprep.subr.bf16.mxu0 %v2932_v9  ;;  %v2999_v46 = vld [vmem:[%s4486_s3 + $0x1c4] ss:$16 sps:$4 sm:$0xff]   ;;  %v2979_v47 = vld [vmem:[%s4486_s3 + $0x4c] ss:$16 sps:$4 sm:$0xff]   ;;  %v3004_v48 = vld [vmem:[%s4486_s3 + $0x1c0] ss:$16 sps:$4 sm:$0xff]  }
  0x11   :  { %v3005_v49 = vld [vmem:[%s4486_s3 + $0x1a4] ss:$16 sps:$4 sm:$0xff]   ;;  %v2977_v50 = vld [vmem:[%s4486_s3 + $0x48] ss:$16 sps:$4 sm:$0xff]   ;;  %v2985_v51 = vld [vmem:[%s4486_s3 + $0x2c] ss:$16 sps:$4 sm:$0xff]  }
  0x12   :  { %605 = vmatpush1.bf16.msra.mxu1 %v2968_v23  ;;  %v3010_v52 = vld [vmem:[%s4486_s3 + $0x1a0] ss:$16 sps:$4 sm:$0xff]   ;;  %v3011_v53 = vld [vmem:[%s4486_s3 + $0x184] ss:$16 sps:$4 sm:$0xff]   ;;  %v2983_v54 = vld [vmem:[%s4486_s3 + $0x28] ss:$16 sps:$4 sm:$0xff]  }
  0x13   :  { %152 = vmatpush1.bf16.msra.mxu0 %v2934_v11  ;;  %606 = vmatprep.subr.bf16.mxu1 %v2969_v24  ;;  %v2991_v55 = vld [vmem:[%s4486_s3 + $0xc] ss:$16 sps:$4 sm:$0xff]   ;;  %v3016_v56 = vld [vmem:[%s4486_s3 + $0x180] ss:$16 sps:$4 sm:$0xff]   ;;  %v3017_v57 = vld [vmem:[%s4486_s3 + $0x164] ss:$16 sps:$4 sm:$0xff]  }
  0x14   :  { %153 = vmatprep.subr.bf16.mxu0 %v2935_v14  ;;  %v2989_v58 = vld [vmem:[%s4486_s3 + $0x8] ss:$16 sps:$4 sm:$0xff]   ;;  %v2997_v59 = vld [vmem:[%s4486_s3 + $0x1ec] ss:$16 sps:$4 sm:$0xff]   ;;  %v3022_v60 = vld [vmem:[%s4486_s3 + $0x160] ss:$16 sps:$4 sm:$0xff]  }
  0x15   :  { %v2995_v61 = vld [vmem:[%s4486_s3 + $0x1e8] ss:$16 sps:$4 sm:$0xff]   ;;  %v3003_v62 = vld [vmem:[%s4486_s3 + $0x1cc] ss:$16 sps:$4 sm:$0xff]   ;;  %v3023_v6 = vld [vmem:[%s4486_s3 + $0x144] ss:$16 sps:$4 sm:$0xff]  }
  0x16   :  { %607 = vmatpush1.bf16.msra.mxu1 %v2974_v27  ;;  %v3001_v63 = vld [vmem:[%s4486_s3 + $0x1c8] ss:$16 sps:$4 sm:$0xff]   ;;  %v3009_v0 = vld [vmem:[%s4486_s3 + $0x1ac] ss:$16 sps:$4 sm:$0xff]   ;;  %v3028_v9 = vld [vmem:[%s4486_s3 + $0x140] ss:$16 sps:$4 sm:$0xff]  }
  0x17   :  { %154 = vmatpush1.bf16.msra.mxu0 %v2937_v17  ;;  %608 = vmatprep.subr.bf16.mxu1 %v2975_v28  ;;  %v3007_v1 = vld [vmem:[%s4486_s3 + $0x1a8] ss:$16 sps:$4 sm:$0xff]   ;;  %v3015_v2 = vld [vmem:[%s4486_s3 + $0x18c] ss:$16 sps:$4 sm:$0xff]   ;;  %v3029_v10 = vld [vmem:[%s4486_s3 + $0x124] ss:$16 sps:$4 sm:$0xff]  }
  0x18   :  { %155 = vmatprep.subr.bf16.mxu0 %v2938_v18  ;;  %v3013_v3 = vld [vmem:[%s4486_s3 + $0x188] ss:$16 sps:$4 sm:$0xff]   ;;  %v3021_v4 = vld [vmem:[%s4486_s3 + $0x16c] ss:$16 sps:$4 sm:$0xff]   ;;  %v3034_v13 = vld [vmem:[%s4486_s3 + $0x120] ss:$16 sps:$4 sm:$0xff]  }
  0x19   :  { %v3019_v5 = vld [vmem:[%s4486_s3 + $0x168] ss:$16 sps:$4 sm:$0xff]   ;;  %v3027_v7 = vld [vmem:[%s4486_s3 + $0x14c] ss:$16 sps:$4 sm:$0xff]   ;;  %v3035_v14 = vld [vmem:[%s4486_s3 + $0x104] ss:$16 sps:$4 sm:$0xff]  }
  0x1a   :  { %609 = vmatpush1.bf16.msra.mxu1 %v2980_v32  ;;  %v3025_v8 = vld [vmem:[%s4486_s3 + $0x148] ss:$16 sps:$4 sm:$0xff]   ;;  %v3033_v11 = vld [vmem:[%s4486_s3 + $0x12c] ss:$16 sps:$4 sm:$0xff]   ;;  %v3040_v17 = vld [vmem:[%s4486_s3 + $0x100] ss:$16 sps:$4 sm:$0xff]  }
  0x1b   :  { %156 = vmatpush1.bf16.msra.mxu0 %v2940_v21  ;;  %610 = vmatprep.subr.bf16.mxu1 %v2981_v33  ;;  %v3031_v12 = vld [vmem:[%s4486_s3 + $0x128] ss:$16 sps:$4 sm:$0xff]   ;;  %v3039_v15 = vld [vmem:[%s4486_s3 + $0x10c] ss:$16 sps:$4 sm:$0xff]   ;;  %v3707_v21 = vshrl.u32 %v47_v20, 7 }
  0x1c   :  { %157 = vmatprep.subr.bf16.mxu0 %v2941_v22  ;;  %v3037_v16 = vld [vmem:[%s4486_s3 + $0x108] ss:$16 sps:$4 sm:$0xff]   ;;  %v45_v24 = vld [vmem:[%s4488_s2] sm:$0x3] }
  0x1d   :  { %v3043_v18 = vld [vmem:[%s4487_s5 + $0x18c] ss:$28 sps:$4 sm:$0xff]   ;;  %v3710_v22 = vsub.s32 1, %v3707_v21  ;;  %v3713_v23 = vsub.s32 0, %v3707_v21  ;;  %v3112_v20 = vld [vmem:[%s4487_s5 + $0x624] ss:$28 sps:$4 sm:$0xff]  }
  0x1e   :  { %611 = vmatpush1.bf16.msra.mxu1 %v2986_v36  ;;  %v3046_v19 = vld [vmem:[%s4487_s5 + $0x50c] ss:$28 sps:$4 sm:$0xff]  }
  0x1f   :  { %158 = vmatpush1.bf16.msra.mxu0 %v2943_v25  ;;  %612 = vmatprep.subr.bf16.mxu1 %v2987_v37  ;;  %v50_v27 = vrot.slane %v45_v24, %v3713_v23 }
  0x20   :  { %641 = vmatprep.subr.bf16.mxu0 %v2949_v26  ;;  %v54_v26 = vrot.slane %v45_v24, %v3710_v22  ;;  %v3107_v24 = vld [vmem:[%s4487_s5 + $0x2a0] ss:$28 sps:$4 sm:$0xff]  }
  0x22   :  { %176 = vmatmul.mubr.bf16.vlgmr.msra.gmra.mxu0 %v2944_v29  ;;  %613 = vmatpush1.bf16.msra.mxu1 %v2992_v40  ;;  %v3041_v40 = vld [vmem:[%s4487_s5 + $0x188] ss:$28 sps:$4 sm:$0xff]  }
  0x23   :  { %642 = vmatpush1.bf16.msra.mxu0 %v2947_v30  ;;  %614 = vmatprep.subr.bf16.mxu1 %v2993_v41  ;;  %v3044_v41 = vld [vmem:[%s4487_s5 + $0x508] ss:$28 sps:$4 sm:$0xff]  }
  0x24   :  { %643 = vmatprep.subr.bf16.mxu0 %v2955_v31 }
  0x26   :  { %615 = vmatpush2.bf16.msra.mxu1 %v2998_v44  ;;  %v3052_v44 = vld [vmem:[%s4487_s5 + $0x4d4] ss:$28 sps:$4 sm:$0xff]  }
  0x27   :  { %644 = vmatpush1.bf16.msra.mxu0 %v2953_v34  ;;  %616 = vmatprep.subr.bf16.mxu1 %v2999_v46  ;;  %v3050_v46 = vld [vmem:[%s4487_s5 + $0x4d0] ss:$28 sps:$4 sm:$0xff]  }
  0x28   :  { %645 = vmatprep.subr.bf16.mxu0 %v2961_v35 }
  0x2a   :  { %617 = vmatpush2.bf16.msra.mxu1 %v3004_v48  ;;  %v3058_v48 = vld [vmem:[%s4487_s5 + $0x49c] ss:$28 sps:$4 sm:$0xff]  }
  0x2b   :  { %646 = vmatpush1.bf16.msra.mxu0 %v2959_v38  ;;  %618 = vmatprep.subr.bf16.mxu1 %v3005_v49  ;;  %v3053_v49 = vld [vmem:[%s4487_s5 + $0x118] ss:$28 sps:$4 sm:$0xff]  }
  0x2c   :  { %647 = vmatprep.subr.bf16.mxu0 %v2967_v39 }
  0x2e   :  { %619 = vmatpush2.bf16.msra.mxu1 %v3010_v52  ;;  %v3064_v52 = vld [vmem:[%s4487_s5 + $0x464] ss:$28 sps:$4 sm:$0xff]  }
  0x2f   :  { %648 = vmatpush1.bf16.msra.mxu0 %v2965_v42  ;;  %620 = vmatprep.subr.bf16.mxu1 %v3011_v53  ;;  %v3059_v53 = vld [vmem:[%s4487_s5 + $0xe0] ss:$28 sps:$4 sm:$0xff]  }
  0x30   :  { %649 = vmatprep.subr.bf16.mxu0 %v2973_v43  ;;  %v3049_v43 = vld [vmem:[%s4487_s5 + $0x154] ss:$28 sps:$4 sm:$0xff]  }
  0x32   :  { %621 = vmatpush2.bf16.msra.mxu1 %v3016_v56  ;;  %v3070_v56 = vld [vmem:[%s4487_s5 + $0x42c] ss:$28 sps:$4 sm:$0xff]  }
  0x33   :  { %650 = vmatpush1.bf16.msra.mxu0 %v2971_v45  ;;  %622 = vmatprep.subr.bf16.mxu1 %v3017_v57  ;;  %v3047_v45 = vld [vmem:[%s4487_s5 + $0x150] ss:$28 sps:$4 sm:$0xff]   ;;  %v3065_v57 = vld [vmem:[%s4487_s5 + $0xa8] ss:$28 sps:$4 sm:$0xff]  }
  0x34   :  { %651 = vmatprep.subr.bf16.mxu0 %v2979_v47  ;;  %v3055_v47 = vld [vmem:[%s4487_s5 + $0x11c] ss:$28 sps:$4 sm:$0xff]  }
  0x36   :  { %623 = vmatpush2.bf16.msra.mxu1 %v3022_v60  ;;  %v3076_v60 = vld [vmem:[%s4487_s5 + $0x3f4] ss:$28 sps:$4 sm:$0xff]  }
  0x37   :  { %652 = vmatpush1.bf16.msra.mxu0 %v2977_v50  ;;  %624 = vmatprep.subr.bf16.mxu1 %v3023_v6  ;;  %v3056_v50 = vld [vmem:[%s4487_s5 + $0x498] ss:$28 sps:$4 sm:$0xff]   ;;  %v3086_v6 = vld [vmem:[%s4487_s5 + $0x380] ss:$28 sps:$4 sm:$0xff]  }
  0x38   :  { %653 = vmatprep.subr.bf16.mxu0 %v2985_v51  ;;  %v3061_v51 = vld [vmem:[%s4487_s5 + $0xe4] ss:$28 sps:$4 sm:$0xff]  }
  0x3a   :  { %625 = vmatpush2.bf16.msra.mxu1 %v3028_v9  ;;  %v3089_v9 = vld [vmem:[%s4487_s5 + $0x348] ss:$28 sps:$4 sm:$0xff]  }
  0x3b   :  { %654 = vmatpush1.bf16.msra.mxu0 %v2983_v54  ;;  %626 = vmatprep.subr.bf16.mxu1 %v3029_v10  ;;  %v3062_v54 = vld [vmem:[%s4487_s5 + $0x460] ss:$28 sps:$4 sm:$0xff]   ;;  %v3092_v10 = vld [vmem:[%s4487_s5 + $0x6c8] ss:$28 sps:$4 sm:$0xff]  }
  0x3c   :  { %655 = vmatprep.subr.bf16.mxu0 %v2991_v55  ;;  %v3067_v55 = vld [vmem:[%s4487_s5 + $0xac] ss:$28 sps:$4 sm:$0xff]  }
  0x3e   :  { %627 = vmatpush2.bf16.msra.mxu1 %v3034_v13  ;;  %v3095_v13 = vld [vmem:[%s4487_s5 + $0x310] ss:$28 sps:$4 sm:$0xff]  }
  0x3f   :  { %656 = vmatpush1.bf16.msra.mxu0 %v2989_v58  ;;  %628 = vmatprep.subr.bf16.mxu1 %v3035_v14  ;;  %v3068_v58 = vld [vmem:[%s4487_s5 + $0x428] ss:$28 sps:$4 sm:$0xff]   ;;  %v3098_v14 = vld [vmem:[%s4487_s5 + $0x690] ss:$28 sps:$4 sm:$0xff]  }
  0x40   :  { %657 = vmatprep.subr.bf16.mxu0 %v2997_v59  ;;  %v3073_v59 = vld [vmem:[%s4487_s5 + $0x74] ss:$28 sps:$4 sm:$0xff]  }
  0x42   :  { %629 = vmatpush2.bf16.msra.mxu1 %v3040_v17  ;;  %v3101_v17 = vld [vmem:[%s4487_s5 + $0x2d8] ss:$28 sps:$4 sm:$0xff]  }
  0x43   :  { %658 = vmatpush2.bf16.msra.mxu0 %v2995_v61  ;;  %2141 = vmatprep.subr.bf16.mxu1 %v3043_v18  ;;  %v3071_v61 = vld [vmem:[%s4487_s5 + $0x70] ss:$28 sps:$4 sm:$0xff]   ;;  %v3104_v18 = vld [vmem:[%s4487_s5 + $0x658] ss:$28 sps:$4 sm:$0xff]  }
  0x44   :  { %659 = vmatprep.subr.bf16.mxu0 %v3003_v62  ;;  %v3074_v62 = vld [vmem:[%s4487_s5 + $0x3f0] ss:$28 sps:$4 sm:$0xff]  }
  0x47   :  { %660 = vmatpush2.bf16.msra.mxu0 %v3001_v63  ;;  %v3079_v63 = vld [vmem:[%s4487_s5 + $0x3c] ss:$28 sps:$4 sm:$0xff]  }
  0x48   :  { %661 = vmatprep.subr.bf16.mxu0 %v3009_v0  ;;  %v3082_v0 = vld [vmem:[%s4487_s5 + $0x3bc] ss:$28 sps:$4 sm:$0xff]  }
  0x4b   :  { %662 = vmatpush2.bf16.msra.mxu0 %v3007_v1  ;;  %v3077_v1 = vld [vmem:[%s4487_s5 + $0x38] ss:$28 sps:$4 sm:$0xff]  }
  0x4c   :  { %663 = vmatprep.subr.bf16.mxu0 %v3015_v2  ;;  %v3080_v2 = vld [vmem:[%s4487_s5 + $0x3b8] ss:$28 sps:$4 sm:$0xff]  }
  0x4f   :  { %664 = vmatpush2.bf16.msra.mxu0 %v3013_v3  ;;  %v3085_v3 = vld [vmem:[%s4487_s5 + $0x4] ss:$28 sps:$4 sm:$0xff]  }
  0x50   :  { %665 = vmatprep.subr.bf16.mxu0 %v3021_v4  ;;  %v3088_v4 = vld [vmem:[%s4487_s5 + $0x384] ss:$28 sps:$4 sm:$0xff]  }
  0x53   :  { %666 = vmatpush2.bf16.msra.mxu0 %v3019_v5  ;;  %v3083_v5 = vld [vmem:[%s4487_s5] ss:$28 sps:$4 sm:$0xff]  }
  0x54   :  { %667 = vmatprep.subr.bf16.mxu0 %v3027_v7  ;;  %v3091_v7 = vld [vmem:[%s4487_s5 + $0x34c] ss:$28 sps:$4 sm:$0xff]  }
  0x57   :  { %668 = vmatpush2.bf16.msra.mxu0 %v3025_v8  ;;  %v3094_v8 = vld [vmem:[%s4487_s5 + $0x6cc] ss:$28 sps:$4 sm:$0xff]  }
  0x58   :  { %669 = vmatprep.subr.bf16.mxu0 %v3033_v11  ;;  %v3097_v11 = vld [vmem:[%s4487_s5 + $0x314] ss:$28 sps:$4 sm:$0xff]  }
  0x5b   :  { %670 = vmatpush2.bf16.msra.mxu0 %v3031_v12  ;;  %v3100_v12 = vld [vmem:[%s4487_s5 + $0x694] ss:$28 sps:$4 sm:$0xff]  }
  0x5c   :  { %671 = vmatprep.subr.bf16.mxu0 %v3039_v15  ;;  %v3103_v15 = vld [vmem:[%s4487_s5 + $0x2dc] ss:$28 sps:$4 sm:$0xff]  }
  0x5f   :  { %672 = vmatpush2.bf16.msra.mxu0 %v3037_v16  ;;  %v3106_v16 = vld [vmem:[%s4487_s5 + $0x65c] ss:$28 sps:$4 sm:$0xff]  }
  0x60   :  { %2184 = vmatprep.subr.bf16.mxu0 %v3046_v19  ;;  %v3109_v19 = vld [vmem:[%s4487_s5 + $0x2a4] ss:$28 sps:$4 sm:$0xff]  }
  0xe2   :  { %v177_v25 = vpop.f32.mrf.mxu0 }
  0xe3   :  { %v178_v32 = vadd.f32 %v177_v25, %v50_v27  ;;  %v3110_v25 = vld [vmem:[%s4487_s5 + $0x620] ss:$28 sps:$4 sm:$0xff]  }
  0xe4   :  { %v179_v28 = vpop.f32.mrf.mxu0 }
  0xe5   :  { %v180_v30 = vadd.f32 %v179_v28, %v54_v26  ;;  %v186_v38 = vmax.f32 %v178_v32, 0.0  ;;  %v3113_v28 = vld [vmem:[%s4487_s5 + $0x268] ss:$28 sps:$4 sm:$0xff]   ;;  %v3119_v32 = vld [vmem:[%s4487_s5 + $0x230] ss:$28 sps:$4 sm:$0xff]  }
  0xe6   :  { %v181_v29 = vpop.f32.mrf.mxu0 }
  0xe7   :  { %v182_v31 = vadd.f32 %v181_v29, %v50_v27  ;;  %v187_v36 = vmax.f32 %v180_v30, 0.0  ;;  %v3118_v27 = vld [vmem:[%s4487_s5 + $0x5ec] ss:$28 sps:$4 sm:$0xff]   ;;  %v3121_v30 = vld [vmem:[%s4487_s5 + $0x234] ss:$28 sps:$4 sm:$0xff]  }
  0xe8   :  { %v183_v33 = vpop.f32.mrf.mxu0  ;;  %v3116_v29 = vld [vmem:[%s4487_s5 + $0x5e8] ss:$28 sps:$4 sm:$0xff]  }
  0xe9   :  { %v184_v34 = vadd.f32 %v183_v33, %v54_v26  ;;  %v188_v35 = vmax.f32 %v182_v31, 0.0  ;;  %v3115_v26 = vld [vmem:[%s4487_s5 + $0x26c] ss:$28 sps:$4 sm:$0xff]   ;;  %v3124_v31 = vld [vmem:[%s4487_s5 + $0x5b4] ss:$28 sps:$4 sm:$0xff]  }
  0xea   :  { %v3122_v33 = vld [vmem:[%s4487_s5 + $0x5b0] ss:$28 sps:$4 sm:$0xff]  }
  0xeb   :  { %v189_v37 = vmax.f32 %v184_v34, 0.0  ;;  %v190_v42 = vpack.c.bf16 %v188_v35, %v186_v38  ;;  %v3127_v34 = vld [vmem:[%s4487_s5 + $0x1fc] ss:$28 sps:$4 sm:$0xff]   ;;  %v3133_v38 = vld [vmem:[%s4487_s5 + $0x1c4] ss:$28 sps:$4 sm:$0xff]  }
  0xec   :  { %v3130_v35 = vld [vmem:[%s4487_s5 + $0x57c] ss:$28 sps:$4 sm:$0xff]  }
  0xed   :  { %v191_v39 = vpack.c.bf16 %v189_v37, %v187_v36  ;;  %v3125_v36 = vld [vmem:[%s4487_s5 + $0x1f8] ss:$28 sps:$4 sm:$0xff]  }
  0xee   :  { %v3128_v37 = vld [vmem:[%s4487_s5 + $0x578] ss:$28 sps:$4 sm:$0xff]  }
  0xef   :  { %630 = vmatprep.mubr.bf16.mxu1 %v191_v39  ;;  %673 = vmatprep.mubr.bf16.mxu0 %v191_v39  ;;  %v3136_v39 = vld [vmem:[%s4487_s5 + $0x544] ss:$28 sps:$4 sm:$0xff]  }
  0xf0   :  { %631 = vmatmul.mubr.bf16.vlgmr.msra.gmra.mxu1 %v190_v42  ;;  %674 = vmatmul.mubr.bf16.vlgmr.msra.gmra.mxu0 %v190_v42  ;;  %v3139_v42 = vld [vmem:[%s4487_s5 + $0x194] ss:$28 sps:$4 sm:$0xff]  }
  0xf1   :  { %2142 = vmatpush1.bf16.msra.mxu1 %v3041_v40  ;;  %2185 = vmatpush1.bf16.msra.mxu0 %v3044_v41  ;;  %v3131_v40 = vld [vmem:[%s4487_s5 + $0x1c0] ss:$28 sps:$4 sm:$0xff]  }
  0xf2   :  { %2143 = vmatprep.subr.bf16.mxu1 %v3049_v43  ;;  %2186 = vmatprep.subr.bf16.mxu0 %v3052_v44  ;;  %v3134_v41 = vld [vmem:[%s4487_s5 + $0x540] ss:$28 sps:$4 sm:$0xff]   ;;  %v3142_v43 = vld [vmem:[%s4487_s5 + $0x514] ss:$28 sps:$4 sm:$0xff]   ;;  %v272_v44 = vsub.s32 3, %v3707_v21 }
  0xf5   :  { %2144 = vmatpush1.bf16.msra.mxu1 %v3047_v45  ;;  %2187 = vmatpush1.bf16.msra.mxu0 %v3050_v46  ;;  %v268_v45 = vsub.s32 2, %v3707_v21  ;;  %v256_v46 = vld [vmem:[%s4489_s4] sm:$0xf] }
  0xf6   :  { %2145 = vmatprep.subr.bf16.mxu1 %v3055_v47  ;;  %2188 = vmatprep.subr.bf16.mxu0 %v3058_v48 }
  0xf9   :  { %2146 = vmatpush1.bf16.msra.mxu1 %v3053_v49  ;;  %2189 = vmatpush1.bf16.msra.mxu0 %v3056_v50  ;;  %v265_v49 = vrot.slane %v256_v46, %v3710_v22  ;;  %v273_v50 = vrot.slane %v256_v46, %v272_v44 }
  0xfa   :  { %2147 = vmatprep.subr.bf16.mxu1 %v3061_v51  ;;  %2190 = vmatprep.subr.bf16.mxu0 %v3064_v52  ;;  %v261_v51 = vrot.slane %v256_v46, %v3713_v23  ;;  %v269_v52 = vrot.slane %v256_v46, %v268_v45  ;;  %v3181_v46 = vld [vmem:[%s4487_s5 + $0xc] ss:$28 sps:$4 sm:$0xff]  }
  0xfd   :  { %2148 = vmatpush1.bf16.msra.mxu1 %v3059_v53  ;;  %2191 = vmatpush1.bf16.msra.mxu0 %v3062_v54 }
  0xfe   :  { %2149 = vmatprep.subr.bf16.mxu1 %v3067_v55  ;;  %2192 = vmatprep.subr.bf16.mxu0 %v3070_v56 }
 0x101   :  { %2150 = vmatpush1.bf16.msra.mxu1 %v3065_v57  ;;  %2193 = vmatpush1.bf16.msra.mxu0 %v3068_v58 }
 0x102   :  { %2151 = vmatprep.subr.bf16.mxu1 %v3073_v59  ;;  %2194 = vmatprep.subr.bf16.mxu0 %v3076_v60 }
 0x105   :  { %2152 = vmatpush1.bf16.msra.mxu1 %v3071_v61  ;;  %2195 = vmatpush1.bf16.msra.mxu0 %v3074_v62 }
 0x106   :  { %2153 = vmatprep.subr.bf16.mxu1 %v3079_v63  ;;  %2196 = vmatprep.subr.bf16.mxu0 %v3082_v0 }
 0x109   :  { %2154 = vmatpush1.bf16.msra.mxu1 %v3077_v1  ;;  %2197 = vmatpush1.bf16.msra.mxu0 %v3080_v2 }
 0x10a   :  { %2155 = vmatprep.subr.bf16.mxu1 %v3085_v3  ;;  %2198 = vmatprep.subr.bf16.mxu0 %v3088_v4 }
 0x10d   :  { %2156 = vmatpush1.bf16.msra.mxu1 %v3083_v5  ;;  %2199 = vmatpush1.bf16.msra.mxu0 %v3086_v6 }
 0x10e   :  { %2157 = vmatprep.subr.bf16.mxu1 %v3091_v7  ;;  %2200 = vmatprep.subr.bf16.mxu0 %v3094_v8 }
 0x111   :  { %2158 = vmatpush2.bf16.msra.mxu1 %v3089_v9  ;;  %2201 = vmatpush2.bf16.msra.mxu0 %v3092_v10 }
 0x112   :  { %2159 = vmatprep.subr.bf16.mxu1 %v3097_v11  ;;  %2202 = vmatprep.subr.bf16.mxu0 %v3100_v12 }
 0x115   :  { %2160 = vmatpush2.bf16.msra.mxu1 %v3095_v13  ;;  %2203 = vmatpush2.bf16.msra.mxu0 %v3098_v14  ;;  %v3137_v13 = vld [vmem:[%s4487_s5 + $0x190] ss:$28 sps:$4 sm:$0xff]  }
 0x116   :  { %2161 = vmatprep.subr.bf16.mxu1 %v3103_v15  ;;  %2204 = vmatprep.subr.bf16.mxu0 %v3106_v16  ;;  %v3140_v14 = vld [vmem:[%s4487_s5 + $0x510] ss:$28 sps:$4 sm:$0xff]  }
 0x119   :  { %2162 = vmatpush2.bf16.msra.mxu1 %v3101_v17  ;;  %2205 = vmatpush2.bf16.msra.mxu0 %v3104_v18  ;;  %v3145_v17 = vld [vmem:[%s4487_s5 + $0x15c] ss:$28 sps:$4 sm:$0xff]  }
 0x11a   :  { %2163 = vmatprep.subr.bf16.mxu1 %v3109_v19  ;;  %2206 = vmatprep.subr.bf16.mxu0 %v3112_v20  ;;  %v3148_v18 = vld [vmem:[%s4487_s5 + $0x4dc] ss:$28 sps:$4 sm:$0xff]  }
 0x11b   :  { %v3143_v19 = vld [vmem:[%s4487_s5 + $0x158] ss:$28 sps:$4 sm:$0xff]  }
 0x11c   :  { %v3146_v20 = vld [vmem:[%s4487_s5 + $0x4d8] ss:$28 sps:$4 sm:$0xff]  }
 0x11d   :  { %2164 = vmatpush2.bf16.msra.mxu1 %v3107_v24  ;;  %2207 = vmatpush2.bf16.msra.mxu0 %v3110_v25  ;;  %v3151_v24 = vld [vmem:[%s4487_s5 + $0x124] ss:$28 sps:$4 sm:$0xff]  }
 0x11e   :  { %2165 = vmatprep.subr.bf16.mxu1 %v3115_v26  ;;  %2208 = vmatprep.subr.bf16.mxu0 %v3118_v27  ;;  %v3154_v25 = vld [vmem:[%s4487_s5 + $0x4a4] ss:$28 sps:$4 sm:$0xff]  }
 0x11f   :  { %v3149_v26 = vld [vmem:[%s4487_s5 + $0x120] ss:$28 sps:$4 sm:$0xff]  }
 0x120   :  { %v3152_v27 = vld [vmem:[%s4487_s5 + $0x4a0] ss:$28 sps:$4 sm:$0xff]  }
 0x121   :  { %2166 = vmatpush2.bf16.msra.mxu1 %v3113_v28  ;;  %2209 = vmatpush2.bf16.msra.mxu0 %v3116_v29  ;;  %v3157_v28 = vld [vmem:[%s4487_s5 + $0xec] ss:$28 sps:$4 sm:$0xff]  }
 0x122   :  { %2167 = vmatprep.subr.bf16.mxu1 %v3121_v30  ;;  %2210 = vmatprep.subr.bf16.mxu0 %v3124_v31  ;;  %v3160_v29 = vld [vmem:[%s4487_s5 + $0x46c] ss:$28 sps:$4 sm:$0xff]  }
 0x123   :  { %v3155_v30 = vld [vmem:[%s4487_s5 + $0xe8] ss:$28 sps:$4 sm:$0xff]  }
 0x124   :  { %v3158_v31 = vld [vmem:[%s4487_s5 + $0x468] ss:$28 sps:$4 sm:$0xff]  }
 0x125   :  { %2168 = vmatpush2.bf16.msra.mxu1 %v3119_v32  ;;  %2211 = vmatpush2.bf16.msra.mxu0 %v3122_v33  ;;  %v3163_v32 = vld [vmem:[%s4487_s5 + $0xb4] ss:$28 sps:$4 sm:$0xff]  }
 0x126   :  { %2169 = vmatprep.subr.bf16.mxu1 %v3127_v34  ;;  %2212 = vmatprep.subr.bf16.mxu0 %v3130_v35  ;;  %v3166_v33 = vld [vmem:[%s4487_s5 + $0x434] ss:$28 sps:$4 sm:$0xff]  }
 0x127   :  { %v3161_v34 = vld [vmem:[%s4487_s5 + $0xb0] ss:$28 sps:$4 sm:$0xff]  }
 0x128   :  { %v3164_v35 = vld [vmem:[%s4487_s5 + $0x430] ss:$28 sps:$4 sm:$0xff]  }
 0x129   :  { %2170 = vmatpush2.bf16.msra.mxu1 %v3125_v36  ;;  %2213 = vmatpush2.bf16.msra.mxu0 %v3128_v37  ;;  %v3169_v36 = vld [vmem:[%s4487_s5 + $0x7c] ss:$28 sps:$4 sm:$0xff]  }
 0x12a   :  { %2171 = vmatprep.subr.bf16.mxu1 %v3133_v38  ;;  %2214 = vmatprep.subr.bf16.mxu0 %v3136_v39  ;;  %v3172_v37 = vld [vmem:[%s4487_s5 + $0x3fc] ss:$28 sps:$4 sm:$0xff]  }
 0x12b   :  { %v3167_v38 = vld [vmem:[%s4487_s5 + $0x78] ss:$28 sps:$4 sm:$0xff]  }
 0x12c   :  { %v3170_v39 = vld [vmem:[%s4487_s5 + $0x3f8] ss:$28 sps:$4 sm:$0xff]  }
 0x12d   :  { %2172 = vmatpush2.bf16.msra.mxu1 %v3131_v40  ;;  %2215 = vmatpush2.bf16.msra.mxu0 %v3134_v41  ;;  %v3175_v40 = vld [vmem:[%s4487_s5 + $0x44] ss:$28 sps:$4 sm:$0xff]  }
 0x12e   :  { %2227 = vmatprep.subr.bf16.mxu1 %v3139_v42  ;;  %2270 = vmatprep.subr.bf16.mxu0 %v3142_v43  ;;  %v3178_v41 = vld [vmem:[%s4487_s5 + $0x3c4] ss:$28 sps:$4 sm:$0xff]  }
 0x12f   :  { %v3173_v42 = vld [vmem:[%s4487_s5 + $0x40] ss:$28 sps:$4 sm:$0xff]  }
 0x130   :  { %v3176_v43 = vld [vmem:[%s4487_s5 + $0x3c0] ss:$28 sps:$4 sm:$0xff]  }
 0x1b0   :  { %v632_v47 = vpop.f32.mrf.mxu1  ;;  %v675_v48 = vpop.f32.mrf.mxu0 }
 0x1b1   :  { %v633_v61 = vadd.f32 %v632_v47, %v261_v51  ;;  %v676_v62 = vadd.f32 %v675_v48, %v269_v52  ;;  %v3184_v47 = vld [vmem:[%s4487_s5 + $0x38c] ss:$28 sps:$4 sm:$0xff]  }
 0x1b2   :  { %v634_v53 = vpop.f32.mrf.mxu1  ;;  %v677_v54 = vpop.f32.mrf.mxu0  ;;  %v3179_v48 = vld [vmem:[%s4487_s5 + $0x8] ss:$28 sps:$4 sm:$0xff]  }
 0x1b3   :  { %v635_v57 = vadd.f32 %v634_v53, %v265_v49  ;;  %v678_v58 = vadd.f32 %v677_v54, %v273_v50  ;;  %v684_v9 = vmax.f32 %v633_v61, 0.0  ;;  %v686_v10 = vmax.f32 %v676_v62, 0.0  ;;  %v3188_v53 = vld [vmem:[%s4487_s5 + $0x6d0] ss:$28 sps:$4 sm:$0xff]   ;;  %v3193_v54 = vld [vmem:[%s4487_s5 + $0x31c] ss:$28 sps:$4 sm:$0xff]  }
 0x1b4   :  { %v636_v55 = vpop.f32.mrf.mxu1  ;;  %v679_v56 = vpop.f32.mrf.mxu0  ;;  %v3200_v61 = vld [vmem:[%s4487_s5 + $0x660] ss:$28 sps:$4 sm:$0xff]   ;;  %v3205_v62 = vld [vmem:[%s4487_s5 + $0x2ac] ss:$28 sps:$4 sm:$0xff]  }
 0x1b5   :  { %v637_v59 = vadd.f32 %v636_v55, %v261_v51  ;;  %v680_v60 = vadd.f32 %v679_v56, %v269_v52  ;;  %v685_v5 = vmax.f32 %v635_v57, 0.0  ;;  %v687_v6 = vmax.f32 %v678_v58, 0.0  ;;  %v3190_v51 = vld [vmem:[%s4487_s5 + $0x6d4] ss:$28 sps:$4 sm:$0xff]   ;;  %v3196_v55 = vld [vmem:[%s4487_s5 + $0x69c] ss:$28 sps:$4 sm:$0xff]  }
 0x1b6   :  { %v638_v63 = vpop.f32.mrf.mxu1  ;;  %v681_v0 = vpop.f32.mrf.mxu0  ;;  %v3185_v52 = vld [vmem:[%s4487_s5 + $0x350] ss:$28 sps:$4 sm:$0xff]   ;;  %v3191_v56 = vld [vmem:[%s4487_s5 + $0x318] ss:$28 sps:$4 sm:$0xff]   ;;  %v3199_v58 = vld [vmem:[%s4487_s5 + $0x2e4] ss:$28 sps:$4 sm:$0xff]  }
 0x1b7   :  { %v639_v1 = vadd.f32 %v638_v63, %v265_v49  ;;  %v682_v2 = vadd.f32 %v681_v0, %v273_v50  ;;  %v688_v3 = vmax.f32 %v637_v59, 0.0  ;;  %v690_v4 = vmax.f32 %v680_v60, 0.0  ;;  %v3182_v49 = vld [vmem:[%s4487_s5 + $0x388] ss:$28 sps:$4 sm:$0xff]   ;;  %v3187_v50 = vld [vmem:[%s4487_s5 + $0x354] ss:$28 sps:$4 sm:$0xff]  }
 0x1b8   :  { %v3194_v57 = vld [vmem:[%s4487_s5 + $0x698] ss:$28 sps:$4 sm:$0xff]   ;;  %v3202_v59 = vld [vmem:[%s4487_s5 + $0x664] ss:$28 sps:$4 sm:$0xff]   ;;  %v3208_v63 = vld [vmem:[%s4487_s5 + $0x62c] ss:$28 sps:$4 sm:$0xff]  }
 0x1b9   :  { %v689_v7 = vmax.f32 %v639_v1, 0.0  ;;  %v691_v8 = vmax.f32 %v682_v2, 0.0  ;;  %v3933_v15 = vpack.c.bf16 %v688_v3, %v684_v9  ;;  %v3935_v16 = vpack.c.bf16 %v690_v4, %v686_v10  ;;  %v3197_v60 = vld [vmem:[%s4487_s5 + $0x2e0] ss:$28 sps:$4 sm:$0xff]   ;;  %v3203_v0 = vld [vmem:[%s4487_s5 + $0x2a8] ss:$28 sps:$4 sm:$0xff]  }
 0x1ba   :  { %v3206_v1 = vld [vmem:[%s4487_s5 + $0x628] ss:$28 sps:$4 sm:$0xff]   ;;  %v3211_v2 = vld [vmem:[%s4487_s5 + $0x274] ss:$28 sps:$4 sm:$0xff]  }
 0x1bb   :  { %v3923_v11 = vpack.c.bf16 %v689_v7, %v685_v5  ;;  %v3925_v12 = vpack.c.bf16 %v691_v8, %v687_v6  ;;  %v3214_v3 = vld [vmem:[%s4487_s5 + $0x5f4] ss:$28 sps:$4 sm:$0xff]   ;;  %v3217_v6 = vld [vmem:[%s4487_s5 + $0x23c] ss:$28 sps:$4 sm:$0xff]   ;;  %v3223_v10 = vld [vmem:[%s4487_s5 + $0x204] ss:$28 sps:$4 sm:$0xff]  }
 0x1bc   :  { %v3209_v4 = vld [vmem:[%s4487_s5 + $0x270] ss:$28 sps:$4 sm:$0xff]   ;;  %v3220_v7 = vld [vmem:[%s4487_s5 + $0x5bc] ss:$28 sps:$4 sm:$0xff]  }
 0x1bd   :  { %2173 = vmatprep.mubr.bf16.mxu1 %v3923_v11  ;;  %2216 = vmatprep.mubr.bf16.mxu0 %v3925_v12  ;;  %v3212_v5 = vld [vmem:[%s4487_s5 + $0x5f0] ss:$28 sps:$4 sm:$0xff]   ;;  %v3215_v8 = vld [vmem:[%s4487_s5 + $0x238] ss:$28 sps:$4 sm:$0xff]  }
 0x1be   :  { %2174 = vmatmul.mubr.bf16.vlgmr.msra.gmra.mxu1 %v3933_v15  ;;  %2217 = vmatmul.mubr.bf16.vlgmr.msra.gmra.mxu0 %v3935_v16  ;;  %v3218_v9 = vld [vmem:[%s4487_s5 + $0x5b8] ss:$28 sps:$4 sm:$0xff]  }
 0x1bf   :  { %2228 = vmatpush1.bf16.msra.mxu1 %v3137_v13  ;;  %2271 = vmatpush1.bf16.msra.mxu0 %v3140_v14  ;;  %v3226_v13 = vld [vmem:[%s4487_s5 + $0x584] ss:$28 sps:$4 sm:$0xff]  }
 0x1c0   :  { %2259 = vmatprep.mubr.bf16.mxu1 %v3923_v11  ;;  %2302 = vmatprep.mubr.bf16.mxu0 %v3925_v12  ;;  %v3221_v14 = vld [vmem:[%s4487_s5 + $0x200] ss:$28 sps:$4 sm:$0xff]  }
 0x1c1   :  { %2229 = vmatprep.subr.bf16.mxu1 %v3145_v17  ;;  %2272 = vmatprep.subr.bf16.mxu0 %v3148_v18  ;;  %v3224_v17 = vld [vmem:[%s4487_s5 + $0x580] ss:$28 sps:$4 sm:$0xff]   ;;  %v3229_v18 = vld [vmem:[%s4487_s5 + $0x1cc] ss:$28 sps:$4 sm:$0xff]  }
 0x1c3   :  { %2230 = vmatpush1.bf16.msra.mxu1 %v3143_v19  ;;  %2273 = vmatpush1.bf16.msra.mxu0 %v3146_v20  ;;  %v3232_v19 = vld [vmem:[%s4487_s5 + $0x54c] ss:$28 sps:$4 sm:$0xff]  }
 0x1c4   :  { %2231 = vmatprep.subr.bf16.mxu1 %v3151_v24  ;;  %2274 = vmatprep.subr.bf16.mxu0 %v3154_v25  ;;  %v3227_v20 = vld [vmem:[%s4487_s5 + $0x1c8] ss:$28 sps:$4 sm:$0xff]   ;;  %v3235_v25 = vld [vmem:[%s4487_s5 + $0x19c] ss:$28 sps:$4 sm:$0xff]  }
 0x1c5   :  { %v3230_v24 = vld [vmem:[%s4487_s5 + $0x548] ss:$28 sps:$4 sm:$0xff]  }
 0x1c7   :  { %2232 = vmatpush1.bf16.msra.mxu1 %v3149_v26  ;;  %2275 = vmatpush1.bf16.msra.mxu0 %v3152_v27  ;;  %v3238_v26 = vld [vmem:[%s4487_s5 + $0x51c] ss:$28 sps:$4 sm:$0xff]  }
 0x1c8   :  { %2233 = vmatprep.subr.bf16.mxu1 %v3157_v28  ;;  %2276 = vmatprep.subr.bf16.mxu0 %v3160_v29  ;;  %v3233_v27 = vld [vmem:[%s4487_s5 + $0x198] ss:$28 sps:$4 sm:$0xff]   ;;  %v3241_v29 = vld [vmem:[%s4487_s5 + $0x164] ss:$28 sps:$4 sm:$0xff]  }
 0x1c9   :  { %v3236_v28 = vld [vmem:[%s4487_s5 + $0x518] ss:$28 sps:$4 sm:$0xff]  }
 0x1cb   :  { %2234 = vmatpush1.bf16.msra.mxu1 %v3155_v30  ;;  %2277 = vmatpush1.bf16.msra.mxu0 %v3158_v31  ;;  %v3244_v30 = vld [vmem:[%s4487_s5 + $0x4e4] ss:$28 sps:$4 sm:$0xff]  }
 0x1cc   :  { %2235 = vmatprep.subr.bf16.mxu1 %v3163_v32  ;;  %2278 = vmatprep.subr.bf16.mxu0 %v3166_v33  ;;  %v3239_v31 = vld [vmem:[%s4487_s5 + $0x160] ss:$28 sps:$4 sm:$0xff]   ;;  %v3247_v33 = vld [vmem:[%s4487_s5 + $0x12c] ss:$28 sps:$4 sm:$0xff]  }
 0x1cd   :  { %v3242_v32 = vld [vmem:[%s4487_s5 + $0x4e0] ss:$28 sps:$4 sm:$0xff]  }
 0x1cf   :  { %2236 = vmatpush1.bf16.msra.mxu1 %v3161_v34  ;;  %2279 = vmatpush1.bf16.msra.mxu0 %v3164_v35  ;;  %v3250_v34 = vld [vmem:[%s4487_s5 + $0x4ac] ss:$28 sps:$4 sm:$0xff]  }
 0x1d0   :  { %2237 = vmatprep.subr.bf16.mxu1 %v3169_v36  ;;  %2280 = vmatprep.subr.bf16.mxu0 %v3172_v37  ;;  %v3245_v35 = vld [vmem:[%s4487_s5 + $0x128] ss:$28 sps:$4 sm:$0xff]   ;;  %v3253_v37 = vld [vmem:[%s4487_s5 + $0xf4] ss:$28 sps:$4 sm:$0xff]  }
 0x1d1   :  { %v3248_v36 = vld [vmem:[%s4487_s5 + $0x4a8] ss:$28 sps:$4 sm:$0xff]  }
 0x1d3   :  { %2238 = vmatpush1.bf16.msra.mxu1 %v3167_v38  ;;  %2281 = vmatpush1.bf16.msra.mxu0 %v3170_v39  ;;  %v3256_v38 = vld [vmem:[%s4487_s5 + $0x474] ss:$28 sps:$4 sm:$0xff]  }
 0x1d4   :  { %2239 = vmatprep.subr.bf16.mxu1 %v3175_v40  ;;  %2282 = vmatprep.subr.bf16.mxu0 %v3178_v41  ;;  %v3251_v39 = vld [vmem:[%s4487_s5 + $0xf0] ss:$28 sps:$4 sm:$0xff]   ;;  %v3259_v41 = vld [vmem:[%s4487_s5 + $0xbc] ss:$28 sps:$4 sm:$0xff]  }
 0x1d5   :  { %v3254_v40 = vld [vmem:[%s4487_s5 + $0x470] ss:$28 sps:$4 sm:$0xff]  }
 0x1d7   :  { %2240 = vmatpush1.bf16.msra.mxu1 %v3173_v42  ;;  %2283 = vmatpush1.bf16.msra.mxu0 %v3176_v43  ;;  %v3262_v42 = vld [vmem:[%s4487_s5 + $0x43c] ss:$28 sps:$4 sm:$0xff]  }
 0x1d8   :  { %2241 = vmatprep.subr.bf16.mxu1 %v3181_v46  ;;  %2284 = vmatprep.subr.bf16.mxu0 %v3184_v47  ;;  %v3257_v43 = vld [vmem:[%s4487_s5 + $0xb8] ss:$28 sps:$4 sm:$0xff]   ;;  %v3265_v47 = vld [vmem:[%s4487_s5 + $0x84] ss:$28 sps:$4 sm:$0xff]  }
 0x1d9   :  { %v3260_v46 = vld [vmem:[%s4487_s5 + $0x438] ss:$28 sps:$4 sm:$0xff]  }
 0x1db   :  { %2242 = vmatpush1.bf16.msra.mxu1 %v3179_v48  ;;  %2285 = vmatpush1.bf16.msra.mxu0 %v3182_v49  ;;  %v3268_v48 = vld [vmem:[%s4487_s5 + $0x404] ss:$28 sps:$4 sm:$0xff]  }
 0x1dc   :  { %2243 = vmatprep.subr.bf16.mxu1 %v3187_v50  ;;  %2286 = vmatprep.subr.bf16.mxu0 %v3190_v51  ;;  %v3263_v49 = vld [vmem:[%s4487_s5 + $0x80] ss:$28 sps:$4 sm:$0xff]   ;;  %v3271_v51 = vld [vmem:[%s4487_s5 + $0x4c] ss:$28 sps:$4 sm:$0xff]  }
 0x1dd   :  { %v3266_v50 = vld [vmem:[%s4487_s5 + $0x400] ss:$28 sps:$4 sm:$0xff]  }
 0x1df   :  { %2244 = vmatpush2.bf16.msra.mxu1 %v3185_v52  ;;  %2287 = vmatpush2.bf16.msra.mxu0 %v3188_v53  ;;  %v3274_v52 = vld [vmem:[%s4487_s5 + $0x3cc] ss:$28 sps:$4 sm:$0xff]  }
 0x1e0   :  { %2245 = vmatprep.subr.bf16.mxu1 %v3193_v54  ;;  %2288 = vmatprep.subr.bf16.mxu0 %v3196_v55  ;;  %v3269_v53 = vld [vmem:[%s4487_s5 + $0x48] ss:$28 sps:$4 sm:$0xff]   ;;  %v3277_v55 = vld [vmem:[%s4487_s5 + $0x14] ss:$28 sps:$4 sm:$0xff]  }
 0x1e1   :  { %v3272_v54 = vld [vmem:[%s4487_s5 + $0x3c8] ss:$28 sps:$4 sm:$0xff]  }
 0x1e3   :  { %2246 = vmatpush2.bf16.msra.mxu1 %v3191_v56  ;;  %2289 = vmatpush2.bf16.msra.mxu0 %v3194_v57  ;;  %v3280_v56 = vld [vmem:[%s4487_s5 + $0x394] ss:$28 sps:$4 sm:$0xff]  }
 0x1e4   :  { %2247 = vmatprep.subr.bf16.mxu1 %v3199_v58  ;;  %2290 = vmatprep.subr.bf16.mxu0 %v3202_v59  ;;  %v3275_v57 = vld [vmem:[%s4487_s5 + $0x10] ss:$28 sps:$4 sm:$0xff]   ;;  %v3283_v59 = vld [vmem:[%s4487_s5 + $0x35c] ss:$28 sps:$4 sm:$0xff]  }
 0x1e5   :  { %v3278_v58 = vld [vmem:[%s4487_s5 + $0x390] ss:$28 sps:$4 sm:$0xff]  }
 0x1e7   :  { %2248 = vmatpush2.bf16.msra.mxu1 %v3197_v60  ;;  %2291 = vmatpush2.bf16.msra.mxu0 %v3200_v61  ;;  %v3286_v60 = vld [vmem:[%s4487_s5 + $0x6dc] ss:$28 sps:$4 sm:$0xff]  }
 0x1e8   :  { %2249 = vmatprep.subr.bf16.mxu1 %v3205_v62  ;;  %2292 = vmatprep.subr.bf16.mxu0 %v3208_v63  ;;  %v3281_v61 = vld [vmem:[%s4487_s5 + $0x358] ss:$28 sps:$4 sm:$0xff]   ;;  %v3289_v63 = vld [vmem:[%s4487_s5 + $0x324] ss:$28 sps:$4 sm:$0xff]  }
 0x1e9   :  { %v3284_v62 = vld [vmem:[%s4487_s5 + $0x6d8] ss:$28 sps:$4 sm:$0xff]  }
 0x1eb   :  { %2250 = vmatpush2.bf16.msra.mxu1 %v3203_v0  ;;  %2293 = vmatpush2.bf16.msra.mxu0 %v3206_v1  ;;  %v3292_v0 = vld [vmem:[%s4487_s5 + $0x6a4] ss:$28 sps:$4 sm:$0xff]  }
 0x1ec   :  { %2251 = vmatprep.subr.bf16.mxu1 %v3211_v2  ;;  %2294 = vmatprep.subr.bf16.mxu0 %v3214_v3  ;;  %v3287_v1 = vld [vmem:[%s4487_s5 + $0x320] ss:$28 sps:$4 sm:$0xff]   ;;  %v3295_v3 = vld [vmem:[%s4487_s5 + $0x2ec] ss:$28 sps:$4 sm:$0xff]  }
 0x1ed   :  { %v3290_v2 = vld [vmem:[%s4487_s5 + $0x6a0] ss:$28 sps:$4 sm:$0xff]  }
 0x1ef   :  { %2252 = vmatpush2.bf16.msra.mxu1 %v3209_v4  ;;  %2295 = vmatpush2.bf16.msra.mxu0 %v3212_v5  ;;  %v3298_v4 = vld [vmem:[%s4487_s5 + $0x66c] ss:$28 sps:$4 sm:$0xff]  }
 0x1f0   :  { %2253 = vmatprep.subr.bf16.mxu1 %v3217_v6  ;;  %2296 = vmatprep.subr.bf16.mxu0 %v3220_v7  ;;  %v3293_v5 = vld [vmem:[%s4487_s5 + $0x2e8] ss:$28 sps:$4 sm:$0xff]   ;;  %v3301_v7 = vld [vmem:[%s4487_s5 + $0x2b4] ss:$28 sps:$4 sm:$0xff]  }
 0x1f1   :  { %v3296_v6 = vld [vmem:[%s4487_s5 + $0x668] ss:$28 sps:$4 sm:$0xff]  }
 0x1f3   :  { %2254 = vmatpush2.bf16.msra.mxu1 %v3215_v8  ;;  %2297 = vmatpush2.bf16.msra.mxu0 %v3218_v9  ;;  %v3304_v8 = vld [vmem:[%s4487_s5 + $0x634] ss:$28 sps:$4 sm:$0xff]  }
 0x1f4   :  { %2255 = vmatprep.subr.bf16.mxu1 %v3223_v10  ;;  %2298 = vmatprep.subr.bf16.mxu0 %v3226_v13  ;;  %v3299_v9 = vld [vmem:[%s4487_s5 + $0x2b0] ss:$28 sps:$4 sm:$0xff]   ;;  %v3307_v13 = vld [vmem:[%s4487_s5 + $0x27c] ss:$28 sps:$4 sm:$0xff]  }
 0x1f5   :  { %v3302_v10 = vld [vmem:[%s4487_s5 + $0x630] ss:$28 sps:$4 sm:$0xff]  }
 0x1f7   :  { %2256 = vmatpush2.bf16.msra.mxu1 %v3221_v14  ;;  %2299 = vmatpush2.bf16.msra.mxu0 %v3224_v17  ;;  %v3310_v14 = vld [vmem:[%s4487_s5 + $0x5fc] ss:$28 sps:$4 sm:$0xff]  }
 0x1f8   :  { %2257 = vmatprep.subr.bf16.mxu1 %v3229_v18  ;;  %2300 = vmatprep.subr.bf16.mxu0 %v3232_v19  ;;  %v3305_v17 = vld [vmem:[%s4487_s5 + $0x278] ss:$28 sps:$4 sm:$0xff]   ;;  %v3313_v19 = vld [vmem:[%s4487_s5 + $0x244] ss:$28 sps:$4 sm:$0xff]  }
 0x1f9   :  { %v3308_v18 = vld [vmem:[%s4487_s5 + $0x5f8] ss:$28 sps:$4 sm:$0xff]  }
 0x1fb   :  { %2258 = vmatpush2.bf16.msra.mxu1 %v3227_v20  ;;  %2301 = vmatpush2.bf16.msra.mxu0 %v3230_v24  ;;  %v3316_v20 = vld [vmem:[%s4487_s5 + $0x5c4] ss:$28 sps:$4 sm:$0xff]  }
 0x1fc   :  { %2313 = vmatprep.subr.bf16.mxu1 %v3235_v25  ;;  %2356 = vmatprep.subr.bf16.mxu0 %v3238_v26  ;;  %v3311_v24 = vld [vmem:[%s4487_s5 + $0x240] ss:$28 sps:$4 sm:$0xff]   ;;  %v3319_v26 = vld [vmem:[%s4487_s5 + $0x20c] ss:$28 sps:$4 sm:$0xff]  }
 0x1fd   :  { %v3314_v25 = vld [vmem:[%s4487_s5 + $0x5c0] ss:$28 sps:$4 sm:$0xff]  }
 0x1fe   :  { %2260 = vmatmul.mubr.bf16.vlgmr.msra.gmra.mxu1 %v3933_v15  ;;  %2303 = vmatmul.mubr.bf16.vlgmr.msra.gmra.mxu0 %v3935_v16 }
 0x1ff   :  { %2314 = vmatpush1.bf16.msra.mxu1 %v3233_v27  ;;  %2345 = vmatprep.mubr.bf16.mxu1 %v3923_v11  ;;  %v3322_v27 = vld [vmem:[%s4487_s5 + $0x58c] ss:$28 sps:$4 sm:$0xff]  }
 0x200   :  { %2357 = vmatpush1.bf16.msra.mxu0 %v3236_v28  ;;  %2388 = vmatprep.mubr.bf16.mxu0 %v3925_v12  ;;  %v3317_v28 = vld [vmem:[%s4487_s5 + $0x208] ss:$28 sps:$4 sm:$0xff]  }
 0x201   :  { %2315 = vmatprep.subr.bf16.mxu1 %v3241_v29  ;;  %2358 = vmatprep.subr.bf16.mxu0 %v3244_v30  ;;  %v3320_v29 = vld [vmem:[%s4487_s5 + $0x588] ss:$28 sps:$4 sm:$0xff]   ;;  %v3325_v30 = vld [vmem:[%s4487_s5 + $0x1d4] ss:$28 sps:$4 sm:$0xff]  }
 0x203   :  { %2316 = vmatpush1.bf16.msra.mxu1 %v3239_v31  ;;  %v3328_v31 = vld [vmem:[%s4487_s5 + $0x554] ss:$28 sps:$4 sm:$0xff]  }
 0x204   :  { %2359 = vmatpush1.bf16.msra.mxu0 %v3242_v32  ;;  %2317 = vmatprep.subr.bf16.mxu1 %v3247_v33  ;;  %v3323_v32 = vld [vmem:[%s4487_s5 + $0x1d0] ss:$28 sps:$4 sm:$0xff]  }
 0x205   :  { %2360 = vmatprep.subr.bf16.mxu0 %v3250_v34  ;;  %v3326_v33 = vld [vmem:[%s4487_s5 + $0x550] ss:$28 sps:$4 sm:$0xff]   ;;  %v3329_v34 = vld [vmem:[%s4487_s5 + $0x360] ss:$28 sps:$4 sm:$0xff]  }
 0x207   :  { %2318 = vmatpush1.bf16.msra.mxu1 %v3245_v35  ;;  %v3330_v35 = vld [vmem:[%s4487_s5 + $0x6e0] ss:$28 sps:$4 sm:$0xff]  }
 0x208   :  { %2361 = vmatpush1.bf16.msra.mxu0 %v3248_v36  ;;  %2319 = vmatprep.subr.bf16.mxu1 %v3253_v37  ;;  %v3331_v36 = vld [vmem:[%s4487_s5 + $0x1a0] ss:$28 sps:$4 sm:$0xff]  }
 0x209   :  { %2362 = vmatprep.subr.bf16.mxu0 %v3256_v38  ;;  %v3332_v37 = vld [vmem:[%s4487_s5 + $0x520] ss:$28 sps:$4 sm:$0xff]   ;;  %v3333_v38 = vld [vmem:[%s4487_s5 + $0x328] ss:$28 sps:$4 sm:$0xff]  }
 0x20b   :  { %2320 = vmatpush1.bf16.msra.mxu1 %v3251_v39  ;;  %v3334_v39 = vld [vmem:[%s4487_s5 + $0x6a8] ss:$28 sps:$4 sm:$0xff]  }
 0x20c   :  { %2363 = vmatpush1.bf16.msra.mxu0 %v3254_v40  ;;  %2321 = vmatprep.subr.bf16.mxu1 %v3259_v41  ;;  %v3335_v40 = vld [vmem:[%s4487_s5 + $0x168] ss:$28 sps:$4 sm:$0xff]  }
 0x20d   :  { %2364 = vmatprep.subr.bf16.mxu0 %v3262_v42  ;;  %v3336_v41 = vld [vmem:[%s4487_s5 + $0x4e8] ss:$28 sps:$4 sm:$0xff]   ;;  %v3337_v42 = vld [vmem:[%s4487_s5 + $0x2f0] ss:$28 sps:$4 sm:$0xff]  }
 0x20f   :  { %2322 = vmatpush1.bf16.msra.mxu1 %v3257_v43  ;;  %v3338_v43 = vld [vmem:[%s4487_s5 + $0x670] ss:$28 sps:$4 sm:$0xff]  }
 0x210   :  { %2365 = vmatpush1.bf16.msra.mxu0 %v3260_v46  ;;  %2323 = vmatprep.subr.bf16.mxu1 %v3265_v47  ;;  %v3340_v46 = vld [vmem:[%s4487_s5 + $0x4b0] ss:$28 sps:$4 sm:$0xff]   ;;  %v3342_v47 = vld [vmem:[%s4487_s5 + $0x638] ss:$28 sps:$4 sm:$0xff]  }
 0x211   :  { %2366 = vmatprep.subr.bf16.mxu0 %v3268_v48  ;;  %v3343_v48 = vld [vmem:[%s4487_s5 + $0xf8] ss:$28 sps:$4 sm:$0xff]  }
 0x213   :  { %2324 = vmatpush1.bf16.msra.mxu1 %v3263_v49  ;;  %v3344_v49 = vld [vmem:[%s4487_s5 + $0x478] ss:$28 sps:$4 sm:$0xff]  }
 0x214   :  { %2367 = vmatpush1.bf16.msra.mxu0 %v3266_v50  ;;  %2325 = vmatprep.subr.bf16.mxu1 %v3271_v51  ;;  %v3345_v50 = vld [vmem:[%s4487_s5 + $0x280] ss:$28 sps:$4 sm:$0xff]  }
 0x215   :  { %2368 = vmatprep.subr.bf16.mxu0 %v3274_v52  ;;  %v3346_v51 = vld [vmem:[%s4487_s5 + $0x600] ss:$28 sps:$4 sm:$0xff]  }
 0x216   :  { %v3347_v52 = vld [vmem:[%s4487_s5 + $0xc0] ss:$28 sps:$4 sm:$0xff]  }
 0x217   :  { %2326 = vmatpush1.bf16.msra.mxu1 %v3269_v53  ;;  %v3348_v53 = vld [vmem:[%s4487_s5 + $0x440] ss:$28 sps:$4 sm:$0xff]  }
 0x218   :  { %2369 = vmatpush1.bf16.msra.mxu0 %v3272_v54  ;;  %2327 = vmatprep.subr.bf16.mxu1 %v3277_v55  ;;  %v3349_v54 = vld [vmem:[%s4487_s5 + $0x248] ss:$28 sps:$4 sm:$0xff]  }
 0x219   :  { %2370 = vmatprep.subr.bf16.mxu0 %v3280_v56  ;;  %v3350_v55 = vld [vmem:[%s4487_s5 + $0x5c8] ss:$28 sps:$4 sm:$0xff]  }
 0x21a   :  { %v3351_v56 = vld [vmem:[%s4487_s5 + $0x88] ss:$28 sps:$4 sm:$0xff]  }
 0x21b   :  { %2328 = vmatpush1.bf16.msra.mxu1 %v3275_v57  ;;  %v3352_v57 = vld [vmem:[%s4487_s5 + $0x408] ss:$28 sps:$4 sm:$0xff]  }
 0x21c   :  { %2371 = vmatpush1.bf16.msra.mxu0 %v3278_v58  ;;  %2329 = vmatprep.subr.bf16.mxu1 %v3283_v59  ;;  %v3353_v58 = vld [vmem:[%s4487_s5 + $0x210] ss:$28 sps:$4 sm:$0xff]  }
 0x21d   :  { %2372 = vmatprep.subr.bf16.mxu0 %v3286_v60  ;;  %v3354_v59 = vld [vmem:[%s4487_s5 + $0x590] ss:$28 sps:$4 sm:$0xff]  }
 0x21e   :  { %v3355_v60 = vld [vmem:[%s4487_s5 + $0x50] ss:$28 sps:$4 sm:$0xff]  }
 0x21f   :  { %2330 = vmatpush2.bf16.msra.mxu1 %v3281_v61  ;;  %v3356_v61 = vld [vmem:[%s4487_s5 + $0x3d0] ss:$28 sps:$4 sm:$0xff]  }
 0x220   :  { %2373 = vmatpush2.bf16.msra.mxu0 %v3284_v62  ;;  %2331 = vmatprep.subr.bf16.mxu1 %v3289_v63  ;;  %v3357_v62 = vld [vmem:[%s4487_s5 + $0x1d8] ss:$28 sps:$4 sm:$0xff]  }
 0x221   :  { %2374 = vmatprep.subr.bf16.mxu0 %v3292_v0  ;;  %v3358_v63 = vld [vmem:[%s4487_s5 + $0x558] ss:$28 sps:$4 sm:$0xff]  }
 0x222   :  { %v3359_v0 = vld [vmem:[%s4487_s5 + $0x18] ss:$28 sps:$4 sm:$0xff]  }
 0x223   :  { %2332 = vmatpush2.bf16.msra.mxu1 %v3287_v1  ;;  %v3360_v1 = vld [vmem:[%s4487_s5 + $0x398] ss:$28 sps:$4 sm:$0xff]  }
 0x224   :  { %2375 = vmatpush2.bf16.msra.mxu0 %v3290_v2  ;;  %2333 = vmatprep.subr.bf16.mxu1 %v3295_v3  ;;  %v4424_v2 = vld [vmem:[%s4490_s6] sm:$0x7f] }
 0x225   :  { %2376 = vmatprep.subr.bf16.mxu0 %v3298_v4  ;;  %v957_v3 = vrot.slane %v4424_v2, %v3713_v23  ;;  %v961_v4 = vrot.slane %v4424_v2, %v3710_v22 }
 0x227   :  { %2334 = vmatpush2.bf16.msra.mxu1 %v3293_v5 }
 0x228   :  { %2377 = vmatpush2.bf16.msra.mxu0 %v3296_v6  ;;  %2335 = vmatprep.subr.bf16.mxu1 %v3301_v7 }
 0x229   :  { %2378 = vmatprep.subr.bf16.mxu0 %v3304_v8 }
 0x22b   :  { %2336 = vmatpush2.bf16.msra.mxu1 %v3299_v9 }
 0x22c   :  { %2379 = vmatpush2.bf16.msra.mxu0 %v3302_v10  ;;  %2337 = vmatprep.subr.bf16.mxu1 %v3307_v13 }
 0x22d   :  { %2380 = vmatprep.subr.bf16.mxu0 %v3310_v14 }
 0x22f   :  { %2338 = vmatpush2.bf16.msra.mxu1 %v3305_v17 }
 0x230   :  { %2381 = vmatpush2.bf16.msra.mxu0 %v3308_v18  ;;  %2339 = vmatprep.subr.bf16.mxu1 %v3313_v19 }
 0x231   :  { %2382 = vmatprep.subr.bf16.mxu0 %v3316_v20 }
 0x233   :  { %2340 = vmatpush2.bf16.msra.mxu1 %v3311_v24 }
 0x234   :  { %2383 = vmatpush2.bf16.msra.mxu0 %v3314_v25  ;;  %2341 = vmatprep.subr.bf16.mxu1 %v3319_v26 }
 0x235   :  { %2384 = vmatprep.subr.bf16.mxu0 %v3322_v27 }
 0x237   :  { %2342 = vmatpush2.bf16.msra.mxu1 %v3317_v28 }
 0x238   :  { %2385 = vmatpush2.bf16.msra.mxu0 %v3320_v29  ;;  %2343 = vmatprep.subr.bf16.mxu1 %v3325_v30 }
 0x239   :  { %2386 = vmatprep.subr.bf16.mxu0 %v3328_v31 }
 0x23b   :  { %2344 = vmatpush2.bf16.msra.mxu1 %v3323_v32 }
 0x23c   :  { %2387 = vmatpush2.bf16.msra.mxu0 %v3326_v33  ;;  %2875 = vmatprep.subr.bf16.mxu1 %v3329_v34 }
 0x23d   :  { %2897 = vmatprep.subr.bf16.mxu0 %v3330_v35 }
 0x23e   :  { %2346 = vmatmul.mubr.bf16.vlgmr.msra.gmra.mxu1 %v3933_v15 }
 0x23f   :  { %2389 = vmatmul.mubr.bf16.vlgmr.msra.gmra.mxu0 %v3935_v16  ;;  %2876 = vmatpush3.bf16.msra.mxu1 %v3331_v36 }
 0x240   :  { %2431 = vmatprep.mubr.bf16.mxu1 %v3923_v11  ;;  %2898 = vmatpush3.bf16.msra.mxu0 %v3332_v37  ;;  %v3339_v11 = vld [vmem:[%s4487_s5 + $0x130] ss:$28 sps:$4 sm:$0xff]  }
 0x241   :  { %2472 = vmatprep.mubr.bf16.mxu0 %v3925_v12  ;;  %2877 = vmatprep.subr.bf16.mxu1 %v3333_v38  ;;  %v3341_v12 = vld [vmem:[%s4487_s5 + $0x2b8] ss:$28 sps:$4 sm:$0xff]  }
 0x242   :  { %2899 = vmatprep.subr.bf16.mxu0 %v3334_v39 }
 0x243   :  { %2878 = vmatpush3.bf16.msra.mxu1 %v3335_v40 }
 0x244   :  { %2900 = vmatpush3.bf16.msra.mxu0 %v3336_v41  ;;  %2879 = vmatprep.subr.bf16.mxu1 %v3337_v42 }
 0x245   :  { %2901 = vmatprep.subr.bf16.mxu0 %v3338_v43 }
 0x247   :  { %2880 = vmatpush3.bf16.msra.mxu1 %v3339_v11  ;;  %v965_v11 = vrot.slane %v4424_v2, %v268_v45 }
 0x248   :  { %2902 = vmatpush3.bf16.msra.mxu0 %v3340_v46  ;;  %2881 = vmatprep.subr.bf16.mxu1 %v3341_v12  ;;  %v969_v46 = vrot.slane %v4424_v2, %v272_v44 }
 0x249   :  { %2903 = vmatprep.subr.bf16.mxu0 %v3342_v47 }
 0x24b   :  { %2882 = vmatpush3.bf16.msra.mxu1 %v3343_v48 }
 0x24c   :  { %2904 = vmatpush3.bf16.msra.mxu0 %v3344_v49  ;;  %2883 = vmatprep.subr.bf16.mxu1 %v3345_v50 }
 0x24d   :  { %2905 = vmatprep.subr.bf16.mxu0 %v3346_v51 }
 0x24f   :  { %2884 = vmatpush3.bf16.msra.mxu1 %v3347_v52 }
 0x250   :  { %2906 = vmatpush3.bf16.msra.mxu0 %v3348_v53  ;;  %2885 = vmatprep.subr.bf16.mxu1 %v3349_v54 }
 0x251   :  { %2907 = vmatprep.subr.bf16.mxu0 %v3350_v55 }
 0x253   :  { %2886 = vmatpush3.bf16.msra.mxu1 %v3351_v56 }
 0x254   :  { %2908 = vmatpush3.bf16.msra.mxu0 %v3352_v57  ;;  %2887 = vmatprep.subr.bf16.mxu1 %v3353_v58 }
 0x255   :  { %2909 = vmatprep.subr.bf16.mxu0 %v3354_v59 }
 0x257   :  { %2888 = vmatpush3.bf16.msra.mxu1 %v3355_v60 }
 0x258   :  { %2910 = vmatpush3.bf16.msra.mxu0 %v3356_v61  ;;  %2889 = vmatprep.subr.bf16.mxu1 %v3357_v62 }
 0x259   :  { %2911 = vmatprep.subr.bf16.mxu0 %v3358_v63 }
 0x25b   :  { %2890 = vmatpush3.bf16.msra.mxu1 %v3359_v0 }
 0x25c   :  { %2912 = vmatpush3.bf16.msra.mxu0 %v3360_v1 }
 0x25e   :  { %2432 = vmatmul.mubr.bf16.vlgmr.msra.gmra.mxu1 %v3933_v15 }
 0x25f   :  { %2473 = vmatmul.mubr.bf16.vlgmr.msra.gmra.mxu0 %v3935_v16 }
 0x27e   :  { %v2175_v5 = vpop.f32.mrf.mxu1  ;;  %v2218_v6 = vpop.f32.mrf.mxu0 }
 0x27f   :  { %v2176_v7 = vadd.f32 %v2175_v5, %v957_v3 }
 0x280   :  { %v2177_v8 = vpop.f32.mrf.mxu1  ;;  %v2220_v9 = vpop.f32.mrf.mxu0 }
 0x281   :  { %v2219_v10 = vadd.f32 %v2218_v6, %v2176_v7  ;;  %v2178_v15 = vadd.f32 %v2177_v8, %v961_v4 }
 0x282   :  { %v2179_v13 = vpop.f32.mrf.mxu1  ;;  %v2222_v16 = vpop.f32.mrf.mxu0 }
 0x283   :  { %v2481_v14 = vsub.f32 0.0, %v2219_v10  ;;  %v2221_v17 = vadd.f32 %v2220_v9, %v2178_v15  ;;  %v2180_v18 = vadd.f32 %v2179_v13, %v957_v3 }
 0x284   :  { %v2181_v19 = vpop.f32.mrf.mxu1  ;;  %v2224_v26 = vpop.f32.mrf.mxu0 }
 0x285   :  { %v2495_v20 = vmul.f32 1.442695, %v2481_v14  ;;  %v2482_v24 = vsub.f32 0.0, %v2221_v17  ;;  %v2223_v25 = vadd.f32 %v2222_v16, %v2180_v18  ;;  %v2182_v23 = vadd.f32 %v2181_v19, %v961_v4 }
 0x286   :  { %v972_v19 = vsub.s32 4, %v3707_v21 }
 0x287   :  { %3361 = vpow2.f32 %v2495_v20  ;;  %v2497_v22 = vmul.f32 1.442695, %v2482_v24  ;;  %v2488_v27 = vsub.f32 0.0, %v2223_v25  ;;  %v2225_v28 = vadd.f32 %v2224_v26, %v2182_v23 }
 0x288   :  { %v976_v20 = vsub.s32 5, %v3707_v21  ;;  %v973_v24 = vrot.slane %v4424_v2, %v972_v19 }
 0x289   :  { %3363 = vpow2.f32 %v2497_v22  ;;  %v2509_v29 = vmul.f32 1.442695, %v2488_v27  ;;  %v2489_v30 = vsub.f32 0.0, %v2225_v28 }
 0x28a   :  { %v977_v25 = vrot.slane %v4424_v2, %v976_v20 }
 0x28b   :  { %3365 = vpow2.f32 %v2509_v29  ;;  %v2511_v31 = vmul.f32 1.442695, %v2489_v30 }
 0x28d   :  { %3367 = vpow2.f32 %v2511_v31 }
 0x294   :  { %v3362_v32 = vpop.eup %3361 }
 0x295   :  { %v2523_v33 = vadd.f32 1.0, %v3362_v32 }
 0x296   :  { %v3364_v34 = vpop.eup %3363 }
 0x297   :  { %3369 = vrcp.f32 %v2523_v33  ;;  %v2524_v35 = vadd.f32 1.0, %v3364_v34 }
 0x298   :  { %v3366_v36 = vpop.eup %3365 }
 0x299   :  { %3371 = vrcp.f32 %v2524_v35  ;;  %v2530_v37 = vadd.f32 1.0, %v3366_v36 }
 0x29a   :  { %v3368_v38 = vpop.eup %3367 }
 0x29b   :  { %3373 = vrcp.f32 %v2530_v37  ;;  %v2531_v39 = vadd.f32 1.0, %v3368_v38 }
 0x29d   :  { %3375 = vrcp.f32 %v2531_v39 }
 0x2a4   :  { %v3370_v40 = vpop.eup %3369 }
 0x2a5   :  { %2551 = vst [vmem:[%s4491_s7] sm:$0xff] %v3370_v40 }
 0x2a6   :  { %v3372_v41 = vpop.eup %3371 }
 0x2a7   :  { %2552 = vst [vmem:[%s4491_s7 + $0x8] sm:$0xff] %v3372_v41 }
 0x2a8   :  { %v3374_v42 = vpop.eup %3373 }
 0x2a9   :  { %2559 = vst [vmem:[%s4491_s7 + $0x38] sm:$0xff] %v3374_v42 }
 0x2aa   :  { %v3376_v43 = vpop.eup %3375 }
 0x2ab   :  { %2560 = vst [vmem:[%s4491_s7 + $0x40] sm:$0xff] %v3376_v43 }
 0x2be   :  { %v2261_v12 = vpop.f32.mrf.mxu1  ;;  %v2304_v47 = vpop.f32.mrf.mxu0 }
 0x2bf   :  { %v2262_v48 = vadd.f32 %v2261_v12, %v965_v11 }
 0x2c0   :  { %v2263_v49 = vpop.f32.mrf.mxu1  ;;  %v2306_v50 = vpop.f32.mrf.mxu0 }
 0x2c1   :  { %v2305_v51 = vadd.f32 %v2304_v47, %v2262_v48  ;;  %v2264_v52 = vadd.f32 %v2263_v49, %v969_v46 }
 0x2c2   :  { %v2265_v53 = vpop.f32.mrf.mxu1  ;;  %v2308_v54 = vpop.f32.mrf.mxu0 }
 0x2c3   :  { %v2483_v55 = vsub.f32 0.0, %v2305_v51  ;;  %v2307_v56 = vadd.f32 %v2306_v50, %v2264_v52  ;;  %v2266_v57 = vadd.f32 %v2265_v53, %v965_v11 }
 0x2c4   :  { %v2267_v58 = vpop.f32.mrf.mxu1  ;;  %v2310_v62 = vpop.f32.mrf.mxu0 }
 0x2c5   :  { %v2499_v59 = vmul.f32 1.442695, %v2483_v55  ;;  %v2484_v60 = vsub.f32 0.0, %v2307_v56  ;;  %v2309_v45 = vadd.f32 %v2308_v54, %v2266_v57  ;;  %v2268_v61 = vadd.f32 %v2267_v58, %v969_v46 }
 0x2c6   :  { %v980_v56 = vsub.s32 6, %v3707_v21 }
 0x2c7   :  { %3377 = vpow2.f32 %v2499_v59  ;;  %v2501_v44 = vmul.f32 1.442695, %v2484_v60  ;;  %v2490_v63 = vsub.f32 0.0, %v2309_v45  ;;  %v2311_v0 = vadd.f32 %v2310_v62, %v2268_v61 }
 0x2c8   :  { %v981_v59 = vrot.slane %v4424_v2, %v980_v56 }
 0x2c9   :  { %3379 = vpow2.f32 %v2501_v44  ;;  %v2513_v1 = vmul.f32 1.442695, %v2490_v63  ;;  %v2491_v3 = vsub.f32 0.0, %v2311_v0 }
 0x2cb   :  { %3381 = vpow2.f32 %v2513_v1  ;;  %v2515_v4 = vmul.f32 1.442695, %v2491_v3 }
 0x2cd   :  { %3383 = vpow2.f32 %v2515_v4 }
 0x2d4   :  { %v3378_v5 = vpop.eup %3377 }
 0x2d5   :  { %v2525_v6 = vadd.f32 1.0, %v3378_v5 }
 0x2d6   :  { %v3380_v7 = vpop.eup %3379 }
 0x2d7   :  { %3385 = vrcp.f32 %v2525_v6  ;;  %v2526_v8 = vadd.f32 1.0, %v3380_v7 }
 0x2d8   :  { %v3382_v9 = vpop.eup %3381 }
 0x2d9   :  { %3387 = vrcp.f32 %v2526_v8  ;;  %v2532_v10 = vadd.f32 1.0, %v3382_v9 }
 0x2da   :  { %v3384_v15 = vpop.eup %3383 }
 0x2db   :  { %3389 = vrcp.f32 %v2532_v10  ;;  %v2533_v13 = vadd.f32 1.0, %v3384_v15 }
 0x2dd   :  { %3391 = vrcp.f32 %v2533_v13 }
 0x2e4   :  { %v3386_v16 = vpop.eup %3385 }
 0x2e5   :  { %2553 = vst [vmem:[%s4491_s7 + $0x10] sm:$0xff] %v3386_v16 }
 0x2e6   :  { %v3388_v14 = vpop.eup %3387 }
 0x2e7   :  { %2554 = vst [vmem:[%s4491_s7 + $0x18] sm:$0xff] %v3388_v14 }
 0x2e8   :  { %v3390_v17 = vpop.eup %3389 }
 0x2e9   :  { %2561 = vst [vmem:[%s4491_s7 + $0x48] sm:$0xff] %v3390_v17 }
 0x2ea   :  { %v3392_v18 = vpop.eup %3391 }
 0x2eb   :  { %2562 = vst [vmem:[%s4491_s7 + $0x50] sm:$0xff] %v3392_v18 }
 0x2fe   :  { %v2347_v23 = vpop.f32.mrf.mxu1 }
 0x2ff   :  { %v2348_v26 = vadd.f32 %v2347_v23, %v973_v24  ;;  %v2390_v22 = vpop.f32.mrf.mxu0 }
 0x300   :  { %v2349_v27 = vpop.f32.mrf.mxu1 }
 0x301   :  { %v2391_v28 = vadd.f32 %v2390_v22, %v2348_v26  ;;  %v2350_v29 = vadd.f32 %v2349_v27, %v977_v25  ;;  %v2392_v30 = vpop.f32.mrf.mxu0 }
 0x302   :  { %v2351_v31 = vpop.f32.mrf.mxu1 }
 0x303   :  { %v2485_v32 = vsub.f32 0.0, %v2391_v28  ;;  %v2393_v33 = vadd.f32 %v2392_v30, %v2350_v29  ;;  %v2352_v34 = vadd.f32 %v2351_v31, %v973_v24  ;;  %v2394_v35 = vpop.f32.mrf.mxu0 }
 0x304   :  { %v2353_v36 = vpop.f32.mrf.mxu1 }
 0x305   :  { %v2503_v37 = vmul.f32 1.442695, %v2485_v32  ;;  %v2486_v38 = vsub.f32 0.0, %v2393_v33  ;;  %v2395_v39 = vadd.f32 %v2394_v35, %v2352_v34  ;;  %v2354_v40 = vadd.f32 %v2353_v36, %v977_v25  ;;  %v2396_v41 = vpop.f32.mrf.mxu0 }
 0x307   :  { %3393 = vpow2.f32 %v2503_v37  ;;  %v2505_v42 = vmul.f32 1.442695, %v2486_v38  ;;  %v2492_v43 = vsub.f32 0.0, %v2395_v39  ;;  %v2397_v11 = vadd.f32 %v2396_v41, %v2354_v40 }
 0x309   :  { %3395 = vpow2.f32 %v2505_v42  ;;  %v2517_v46 = vmul.f32 1.442695, %v2492_v43  ;;  %v2493_v12 = vsub.f32 0.0, %v2397_v11 }
 0x30b   :  { %3397 = vpow2.f32 %v2517_v46  ;;  %v2519_v47 = vmul.f32 1.442695, %v2493_v12 }
 0x30d   :  { %3399 = vpow2.f32 %v2519_v47 }
 0x314   :  { %v3394_v48 = vpop.eup %3393 }
 0x315   :  { %v2527_v49 = vadd.f32 1.0, %v3394_v48 }
 0x316   :  { %v3396_v50 = vpop.eup %3395 }
 0x317   :  { %3401 = vrcp.f32 %v2527_v49  ;;  %v2528_v51 = vadd.f32 1.0, %v3396_v50 }
 0x318   :  { %v3398_v52 = vpop.eup %3397 }
 0x319   :  { %3403 = vrcp.f32 %v2528_v51  ;;  %v2534_v53 = vadd.f32 1.0, %v3398_v52 }
 0x31a   :  { %v3400_v54 = vpop.eup %3399 }
 0x31b   :  { %3405 = vrcp.f32 %v2534_v53  ;;  %v2535_v55 = vadd.f32 1.0, %v3400_v54 }
 0x31d   :  { %3407 = vrcp.f32 %v2535_v55 }
 0x31e   :  { %v2891_v57 = vpop.f32.mrf.mxu1 }
 0x31f   :  { %v2913_v58 = vpop.f32.mrf.mxu0 }
 0x320   :  { %v2892_v60 = vpop.f32.mrf.mxu1 }
 0x321   :  { %v2893_v45 = vadd.f32 %v2892_v60, %v2891_v57  ;;  %v2914_v61 = vpop.f32.mrf.mxu0 }
 0x322   :  { %v2894_v62 = vpop.f32.mrf.mxu1  ;;  %v2915_v63 = vadd.f32 %v2914_v61, %v2913_v58 }
 0x323   :  { %v2434_v44 = vadd.f32 %v2893_v45, %v981_v59  ;;  %v2916_v0 = vpop.f32.mrf.mxu0 }
 0x324   :  { %v3402_v1 = vpop.eup %3401  ;;  %v2895_v3 = vpop.f32.mrf.mxu1 }
 0x325   :  { %2555 = vst [vmem:[%s4491_s7 + $0x20] sm:$0xff] %v3402_v1  ;;  %v2475_v4 = vadd.f32 %v2915_v63, %v2434_v44  ;;  %v2896_v21 = vadd.f32 %v2895_v3, %v2894_v62  ;;  %v2917_v5 = vpop.f32.mrf.mxu0 }
 0x326   :  { %v3404_v6 = vpop.eup %3403  ;;  %v2918_v8 = vadd.f32 %v2917_v5, %v2916_v0 }
 0x327   :  { %2556 = vst [vmem:[%s4491_s7 + $0x28] sm:$0xff] %v3404_v6  ;;  %v2487_v2 = vsub.f32 0.0, %v2475_v4  ;;  %v2437_v7 = vadd.f32 %v2896_v21, %v981_v59 }
 0x328   :  { %v3406_v9 = vpop.eup %3405 }
 0x329   :  { %2563 = vst [vmem:[%s4491_s7 + $0x58] sm:$0xff] %v3406_v9  ;;  %v2507_v10 = vmul.f32 1.442695, %v2487_v2  ;;  %v2478_v15 = vadd.f32 %v2918_v8, %v2437_v7 }
 0x32a   :  { %v3408_v13 = vpop.eup %3407 }
 0x32b   :  { %2564 = vst [vmem:[%s4491_s7 + $0x60] sm:$0xff] %v3408_v13  ;;  %3409 = vpow2.f32 %v2507_v10  ;;  %v2494_v16 = vsub.f32 0.0, %v2478_v15 }
 0x32d   :  { %v2521_v14 = vmul.f32 1.442695, %v2494_v16 }
 0x32f   :  { %3411 = vpow2.f32 %v2521_v14 }
 0x338   :  { %v3410_v17 = vpop.eup %3409 }
 0x339   :  { %v2529_v18 = vadd.f32 1.0, %v3410_v17 }
 0x33b   :  { %3413 = vrcp.f32 %v2529_v18 }
 0x33c   :  { %v3412_v19 = vpop.eup %3411 }
 0x33d   :  { %v2536_v20 = vadd.f32 1.0, %v3412_v19 }
 0x33f   :  { %3415 = vrcp.f32 %v2536_v20 }
 0x348   :  { %v3414_v24 = vpop.eup %3413 }
 0x349   :  { %2558 = vst.msk [vmem:[%s4491_s7 + $0x30] sm:$0xff] %vm2557_vm0, %v3414_v24 }
 0x34c   :  { %v3416_v25 = vpop.eup %3415 }
 0x34d   :  { %2565 = vst.msk [vmem:[%s4491_s7 + $0x68] sm:$0xff] %vm2557_vm0, %v3416_v25 }

</bundles_post_ra>
